<compile_context>
chip_gen: v7x
topology: tpu7x:2x2x1
jax: 0.10.0
libtpu: 0.0.40
codegen_flags: <defaults>
</compile_context>

<pallas_src>
import math
import numpy as np
import jax
import jax.numpy as jnp
from jax.experimental import pallas as pl
from jax.experimental.pallas import tpu as pltpu

SQRT_HALF = np.float32(math.sqrt(0.5))
KSIZE = 5
PAD = (KSIZE - 1) // 2


# ------------------------------ Pallas kernel -------------------------------

def encoder_conv_kernel(emb_ref, w_ref, b_ref, sb_ref, gw_ref, gb_ref,
                        o_ref, xpad_ref):
    # emb_ref : (1, T, H)        char embedding for one batch element
    # w_ref   : (L, 5, H, 2H)    folded weight-norm conv weights (resident)
    # b_ref   : (L, 2H)          conv biases
    # sb_ref  : (1, L, H)        precomputed speaker bias per layer (this n)
    # gw_ref  : (1, H)           gate_fc weight as a lane row
    # gb_ref  : (1, 1)           gate_fc bias
    # o_ref   : (1, T, H)
    # xpad_ref: (T+4, H) VMEM scratch holding the time-padded activation
    T = o_ref.shape[1]
    H = o_ref.shape[2]
    L = w_ref.shape[0]

    emb = emb_ref[0].astype(jnp.float32)                    # (T, H)

    # In-kernel zero padding of the time axis; pad rows stay zero across layers.
    xpad_ref[0:PAD, :] = jnp.zeros((PAD, H), jnp.float32)
    xpad_ref[PAD + T:PAD + T + PAD, :] = jnp.zeros((PAD, H), jnp.float32)
    xpad_ref[PAD:PAD + T, :] = emb

    b_all = b_ref[...]                                      # (L, 2H)
    sb_all = sb_ref[0]                                      # (L, H)

    for l in range(L):                                      # 7 layers, fully in VMEM
        xp = xpad_ref[...]                                  # (T+4, H)
        # accumulator initialized from the broadcast bias (saves one add)
        acc = jnp.broadcast_to(b_all[l:l + 1, :], (T, 2 * H)).astype(jnp.float32)
        for k in range(KSIZE):                              # conv1d = 5 shifted matmuls (MXU)
            acc = acc + jnp.dot(xp[k:k + T, :], w_ref[l, k],
                                preferred_element_type=jnp.float32)
        h_filter = jnp.tanh(acc[:, :H]) + sb_all[l:l + 1, :]   # hoisted speaker bias
        h_gate = jax.nn.sigmoid(acc[:, H:])
        res = xp[PAD:PAD + T, :]
        xpad_ref[PAD:PAD + T, :] = (h_filter * h_gate + res) * SQRT_HALF

    # Final gated blend: gate projection as VPU mul + lane reduce (no width-1 MXU op).
    x = xpad_ref[PAD:PAD + T, :]                            # (T, H)
    g = jax.nn.sigmoid(
        jnp.sum(x * gw_ref[...], axis=-1, keepdims=True) + gb_ref[...])   # (T, 1)
    o_ref[0] = (g * emb + (1.0 - g) * x).astype(o_ref.dtype)


# ------------------------------ JAX wrapper ---------------------------------

def encoder_conv_forward(params, tokens, spkr_vec):
    """tokens: (N, T) int32; spkr_vec: (N, 1, S). Returns (N, T, H)."""
    char_emb = jnp.take(params["embedding"], tokens, axis=0)   # (N, T, H) gather glue
    N, T, H = char_emb.shape
    L = params["conv_w"].shape[0]

    # Hoisted speaker bias: removes N*L M=1 MXU matmuls from the hot kernel.
    spkr_bias = (jnp.einsum("ns,lsh->nlh", spkr_vec[:, 0, :], params["fc_w"])
                 + params["fc_b"][None, :, :])                 # (N, L, H)
    gate_w_row = params["gate_w"].T                            # (1, H)

    return pl.pallas_call(
        encoder_conv_kernel,
        out_shape=jax.ShapeDtypeStruct((N, T, H), jnp.float32),
        grid=(N,),
        in_specs=[
            pl.BlockSpec((1, T, H), lambda n: (n, 0, 0)),               # char emb
            pl.BlockSpec((L, KSIZE, H, 2 * H), lambda n: (0, 0, 0, 0)), # conv W (resident)
            pl.BlockSpec((L, 2 * H), lambda n: (0, 0)),                 # conv b
            pl.BlockSpec((1, L, H), lambda n: (n, 0, 0)),               # speaker bias
            pl.BlockSpec((1, H), lambda n: (0, 0)),                     # gate w row
            pl.BlockSpec((1, 1), lambda n: (0, 0)),                     # gate b
        ],
        out_specs=pl.BlockSpec((1, T, H), lambda n: (n, 0, 0)),
        scratch_shapes=[pltpu.VMEM((T + 2 * PAD, H), jnp.float32)],     # padded activation
        compiler_params=pltpu.CompilerParams(
            dimension_semantics=("parallel",)),                         # batch across TCs
    )(char_emb, params["conv_w"], params["conv_b"], spkr_bias,
      gate_w_row, params["gate_b"])


# ---------------------------- pure-JAX reference ----------------------------

def encoder_conv_ref(params, tokens, spkr_vec):
    emb = jnp.take(params["embedding"], tokens, axis=0)
    N, T, H = emb.shape
    out = emb
    L = params["conv_w"].shape[0]
    for l in range(L):
        xp = jnp.pad(out, ((0, 0), (PAD, PAD), (0, 0)))
        acc = jnp.zeros((N, T, 2 * H), jnp.float32)
        for k in range(KSIZE):
            acc = acc + jnp.einsum("nti,io->nto", xp[:, k:k + T], params["conv_w"][l, k])
        acc = acc + params["conv_b"][l]
        hf = jnp.tanh(acc[..., :H])
        hg = jax.nn.sigmoid(acc[..., H:])
        sb = (jnp.einsum("ns,sh->nh", spkr_vec[:, 0, :], params["fc_w"][l])
              + params["fc_b"][l])
        out = ((hf + sb[:, None, :]) * hg + out) * SQRT_HALF
    g = jax.nn.sigmoid(jnp.einsum("nth,ho->nto", out, params["gate_w"])
                       + params["gate_b"][None])
    return g * emb + (1.0 - g) * out


# ------------------------------ parameter init ------------------------------

def init_params(key, vocab_size, hidden_size, spkr_embed_size, num_layer=7):
    H, S, L = hidden_size, spkr_embed_size, num_layer
    k_emb, k_gw, k_gb, k_v, k_g, k_cb, k_fw, k_fb = jax.random.split(key, 8)
    embedding = jax.random.normal(k_emb, (vocab_size, H), jnp.float32) * 0.1
    gate_w = jax.random.normal(k_gw, (H, 1), jnp.float32) * 0.1      # Linear(H,1) weight^T
    gate_b = jax.random.normal(k_gb, (1, 1), jnp.float32) * 0.1
    # weight_norm(Conv1d(H, 2H, 5)): fold g * v / ||v|| into effective weight.
    v = jax.random.normal(k_v, (L, 2 * H, H, KSIZE), jnp.float32) * 0.1
    g = 0.5 + jax.random.uniform(k_g, (L, 2 * H), jnp.float32)
    norm = jnp.sqrt(jnp.sum(v * v, axis=(2, 3), keepdims=True) + 1e-12)
    w_eff = g[:, :, None, None] * v / norm                           # (L, 2H, Hin, K)
    conv_w = jnp.transpose(w_eff, (0, 3, 2, 1))                      # (L, K, Hin, 2H)
    conv_b = jax.random.normal(k_cb, (L, 2 * H), jnp.float32) * 0.1
    fc_w = jax.random.normal(k_fw, (L, S, H), jnp.float32) * 0.1     # spkr_fc weight^T
    fc_b = jax.random.normal(k_fb, (L, H), jnp.float32) * 0.1
    return dict(embedding=embedding, gate_w=gate_w, gate_b=gate_b,
                conv_w=conv_w, conv_b=conv_b, fc_w=fc_w, fc_b=fc_b)


# ----------------------------------- main ------------------------------------

if __name__ == "__main__":
    vocab_size = 20
    hidden_size = 32          # charvec_dim is overridden to hidden_size in __init__
    spkr_embed_size = 16
    N, T = 2, 16

    key = jax.random.PRNGKey(0)
    kp, kt, ks = jax.random.split(key, 3)
    params = init_params(kp, vocab_size, hidden_size, spkr_embed_size)

    tokens = jax.random.randint(kt, (N, T), 0, vocab_size, dtype=jnp.int32)
    spkr_vec = jax.random.normal(ks, (N, 1, spkr_embed_size), jnp.float32)

    fwd = jax.jit(encoder_conv_forward)
    out = jax.block_until_ready(fwd(params, tokens, spkr_vec))

    ref = jax.block_until_ready(encoder_conv_ref(params, tokens, spkr_vec))
    assert out.shape == (N, T, hidden_size)
    np.testing.assert_allclose(np.asarray(out), np.asarray(ref), rtol=1e-4, atol=1e-4)

    # TODO(synk): for production H>=128 / long T, cast MXU operands to bf16 (v6e/v7x)
    # and tile T; here f32 is kept for exact parity with the reference at toy sizes.
    print("KERNEL_OK")
</pallas_src>

<mosaic_0001>
module attributes {stable_mosaic.version = 11 : i64} {
  func.func @encoder_conv_kernel(%arg0: i32, %arg1: memref<1x16x32xf32, #tpu.memory_space<vmem>>, %arg2: memref<7x5x32x64xf32, #tpu.memory_space<vmem>>, %arg3: memref<7x64xf32, #tpu.memory_space<vmem>>, %arg4: memref<1x7x32xf32, #tpu.memory_space<vmem>>, %arg5: memref<1x32xf32, #tpu.memory_space<vmem>>, %arg6: memref<1x1xf32, #tpu.memory_space<vmem>>, %arg7: memref<1x16x32xf32, #tpu.memory_space<vmem>>, %arg8: memref<20x32xf32, #tpu.memory_space<vmem>>) attributes {dimension_semantics = [#tpu.dimension_semantics<parallel>], iteration_bounds = array<i64: 2>, scalar_prefetch = 0 : i64, scratch_operands = 1 : i64, tpu.core_type = #tpu.core_type<tc>, window_params = [{transform_indices = @transform_0, window_bounds = array<i64: 1, 16, 32>}, {pipeline_mode = #tpu.pipeline_mode<synchronous>, transform_indices = @transform_1, window_bounds = array<i64: 7, 5, 32, 64>}, {pipeline_mode = #tpu.pipeline_mode<synchronous>, transform_indices = @transform_2, window_bounds = array<i64: 7, 64>}, {transform_indices = @transform_3, window_bounds = array<i64: 1, 7, 32>}, {pipeline_mode = #tpu.pipeline_mode<synchronous>, transform_indices = @transform_4, window_bounds = array<i64: 1, 32>}, {pipeline_mode = #tpu.pipeline_mode<synchronous>, transform_indices = @transform_5, window_bounds = array<i64: 1, 1>}, {transform_indices = @transform_6, window_bounds = array<i64: 1, 16, 32>}]} {
    %c0 = arith.constant 0 : index
    %c0_0 = arith.constant 0 : index
    %c0_1 = arith.constant 0 : index
    %0 = vector.load %arg1[%c0, %c0_0, %c0_1] : memref<1x16x32xf32, #tpu.memory_space<vmem>>, vector<1x16x32xf32>
    %1 = vector.shape_cast %0 : vector<1x16x32xf32> to vector<16x32xf32>
    %cst = arith.constant 0.000000e+00 : f32
    %2 = vector.broadcast %cst : f32 to vector<2x32xf32>
    %c0_2 = arith.constant 0 : index
    %c0_3 = arith.constant 0 : index
    %3 = vector.load %arg8[%c0_2, %c0_3] : memref<20x32xf32, #tpu.memory_space<vmem>>, vector<2x32xf32>
    tpu.vector_store %arg8[%c0_2, %c0_3], %2 {strides = array<i32>} : memref<20x32xf32, #tpu.memory_space<vmem>>, vector<2x32xf32>,
    %cst_4 = arith.constant 0.000000e+00 : f32
    %4 = vector.broadcast %cst_4 : f32 to vector<2x32xf32>
    %c18 = arith.constant 18 : index
    %c0_5 = arith.constant 0 : index
    %5 = vector.load %arg8[%c18, %c0_5] : memref<20x32xf32, #tpu.memory_space<vmem>>, vector<2x32xf32>
    tpu.vector_store %arg8[%c18, %c0_5], %4 {strides = array<i32>} : memref<20x32xf32, #tpu.memory_space<vmem>>, vector<2x32xf32>,
    %c2 = arith.constant 2 : index
    %c0_6 = arith.constant 0 : index
    %6 = vector.load %arg8[%c2, %c0_6] : memref<20x32xf32, #tpu.memory_space<vmem>>, vector<16x32xf32>
    tpu.vector_store %arg8[%c2, %c0_6], %1 {strides = array<i32>} : memref<20x32xf32, #tpu.memory_space<vmem>>, vector<16x32xf32>,
    %c0_7 = arith.constant 0 : index
    %c0_8 = arith.constant 0 : index
    %7 = vector.load %arg3[%c0_7, %c0_8] : memref<7x64xf32, #tpu.memory_space<vmem>>, vector<7x64xf32>
    %c0_9 = arith.constant 0 : index
    %c0_10 = arith.constant 0 : index
    %c0_11 = arith.constant 0 : index
    %8 = vector.load %arg4[%c0_9, %c0_10, %c0_11] : memref<1x7x32xf32, #tpu.memory_space<vmem>>, vector<1x7x32xf32>
    %9 = vector.shape_cast %8 : vector<1x7x32xf32> to vector<7x32xf32>
    %c0_12 = arith.constant 0 : index
    %c0_13 = arith.constant 0 : index
    %10 = vector.load %arg8[%c0_12, %c0_13] : memref<20x32xf32, #tpu.memory_space<vmem>>, vector<20x32xf32>
    %11 = vector.extract_strided_slice %7 {offsets = [0, 0], sizes = [1, 64], strides = [1, 1]} : vector<7x64xf32> to vector<1x64xf32>
    %12 = vector.shape_cast %11 : vector<1x64xf32> to vector<1x64xf32>
    %13 = vector.broadcast %12 : vector<1x64xf32> to vector<16x64xf32>
    %14 = vector.extract_strided_slice %10 {offsets = [0, 0], sizes = [16, 32], strides = [1, 1]} : vector<20x32xf32> to vector<16x32xf32>
    %c0_14 = arith.constant 0 : index
    %c0_15 = arith.constant 0 : index
    %c0_16 = arith.constant 0 : index
    %c0_17 = arith.constant 0 : index
    %15 = vector.load %arg2[%c0_14, %c0_15, %c0_16, %c0_17] : memref<7x5x32x64xf32, #tpu.memory_space<vmem>>, vector<1x1x32x64xf32>
    %16 = vector.shape_cast %15 : vector<1x1x32x64xf32> to vector<32x64xf32>
    %cst_18 = arith.constant dense<0.000000e+00> : vector<16x64xf32>
    %17 = tpu.matmul %14, %16, %cst_18 {dimension_numbers = #tpu.dot_dimension_numbers<[1], [0], [0], [1], [0, 0, 1, 1], [], []>} : vector<16x32xf32>, vector<32x64xf32>, vector<16x64xf32> -> vector<16x64xf32>
    %18 = arith.addf %13, %17 : vector<16x64xf32>
    %19 = vector.extract_strided_slice %10 {offsets = [1, 0], sizes = [16, 32], strides = [1, 1]} : vector<20x32xf32> to vector<16x32xf32>
    %c0_19 = arith.constant 0 : index
    %c1 = arith.constant 1 : index
    %c0_20 = arith.constant 0 : index
    %c0_21 = arith.constant 0 : index
    %20 = vector.load %arg2[%c0_19, %c1, %c0_20, %c0_21] : memref<7x5x32x64xf32, #tpu.memory_space<vmem>>, vector<1x1x32x64xf32>
    %21 = vector.shape_cast %20 : vector<1x1x32x64xf32> to vector<32x64xf32>
    %cst_22 = arith.constant dense<0.000000e+00> : vector<16x64xf32>
    %22 = tpu.matmul %19, %21, %cst_22 {dimension_numbers = #tpu.dot_dimension_numbers<[1], [0], [0], [1], [0, 0, 1, 1], [], []>} : vector<16x32xf32>, vector<32x64xf32>, vector<16x64xf32> -> vector<16x64xf32>
    %23 = arith.addf %18, %22 : vector<16x64xf32>
    %24 = vector.extract_strided_slice %10 {offsets = [2, 0], sizes = [16, 32], strides = [1, 1]} : vector<20x32xf32> to vector<16x32xf32>
    %c0_23 = arith.constant 0 : index
    %c2_24 = arith.constant 2 : index
    %c0_25 = arith.constant 0 : index
    %c0_26 = arith.constant 0 : index
    %25 = vector.load %arg2[%c0_23, %c2_24, %c0_25, %c0_26] : memref<7x5x32x64xf32, #tpu.memory_space<vmem>>, vector<1x1x32x64xf32>
    %26 = vector.shape_cast %25 : vector<1x1x32x64xf32> to vector<32x64xf32>
    %cst_27 = arith.constant dense<0.000000e+00> : vector<16x64xf32>
    %27 = tpu.matmul %24, %26, %cst_27 {dimension_numbers = #tpu.dot_dimension_numbers<[1], [0], [0], [1], [0, 0, 1, 1], [], []>} : vector<16x32xf32>, vector<32x64xf32>, vector<16x64xf32> -> vector<16x64xf32>
    %28 = arith.addf %23, %27 : vector<16x64xf32>
    %29 = vector.extract_strided_slice %10 {offsets = [3, 0], sizes = [16, 32], strides = [1, 1]} : vector<20x32xf32> to vector<16x32xf32>
    %c0_28 = arith.constant 0 : index
    %c3 = arith.constant 3 : index
    %c0_29 = arith.constant 0 : index
    %c0_30 = arith.constant 0 : index
    %30 = vector.load %arg2[%c0_28, %c3, %c0_29, %c0_30] : memref<7x5x32x64xf32, #tpu.memory_space<vmem>>, vector<1x1x32x64xf32>
    %31 = vector.shape_cast %30 : vector<1x1x32x64xf32> to vector<32x64xf32>
    %cst_31 = arith.constant dense<0.000000e+00> : vector<16x64xf32>
    %32 = tpu.matmul %29, %31, %cst_31 {dimension_numbers = #tpu.dot_dimension_numbers<[1], [0], [0], [1], [0, 0, 1, 1], [], []>} : vector<16x32xf32>, vector<32x64xf32>, vector<16x64xf32> -> vector<16x64xf32>
    %33 = arith.addf %28, %32 : vector<16x64xf32>
    %34 = vector.extract_strided_slice %10 {offsets = [4, 0], sizes = [16, 32], strides = [1, 1]} : vector<20x32xf32> to vector<16x32xf32>
    %c0_32 = arith.constant 0 : index
    %c4 = arith.constant 4 : index
    %c0_33 = arith.constant 0 : index
    %c0_34 = arith.constant 0 : index
    %35 = vector.load %arg2[%c0_32, %c4, %c0_33, %c0_34] : memref<7x5x32x64xf32, #tpu.memory_space<vmem>>, vector<1x1x32x64xf32>
    %36 = vector.shape_cast %35 : vector<1x1x32x64xf32> to vector<32x64xf32>
    %cst_35 = arith.constant dense<0.000000e+00> : vector<16x64xf32>
    %37 = tpu.matmul %34, %36, %cst_35 {dimension_numbers = #tpu.dot_dimension_numbers<[1], [0], [0], [1], [0, 0, 1, 1], [], []>} : vector<16x32xf32>, vector<32x64xf32>, vector<16x64xf32> -> vector<16x64xf32>
    %38 = arith.addf %33, %37 : vector<16x64xf32>
    %39 = vector.extract_strided_slice %38 {offsets = [0, 0], sizes = [16, 32], strides = [1, 1]} : vector<16x64xf32> to vector<16x32xf32>
    %40 = math.tanh %39 : vector<16x32xf32>
    %41 = vector.extract_strided_slice %9 {offsets = [0, 0], sizes = [1, 32], strides = [1, 1]} : vector<7x32xf32> to vector<1x32xf32>
    %42 = vector.broadcast %41 : vector<1x32xf32> to vector<16x32xf32>
    %43 = arith.addf %40, %42 : vector<16x32xf32>
    %44 = vector.extract_strided_slice %38 {offsets = [0, 32], sizes = [16, 32], strides = [1, 1]} : vector<16x64xf32> to vector<16x32xf32>
    %45 = arith.negf %44 : vector<16x32xf32>
    %46 = math.exp %45 : vector<16x32xf32>
    %cst_36 = arith.constant 1.000000e+00 : f32
    %47 = vector.broadcast %cst_36 : f32 to vector<16x32xf32>
    %48 = arith.addf %47, %46 : vector<16x32xf32>
    %49 = arith.divf %47, %48 : vector<16x32xf32>
    %50 = vector.extract_strided_slice %10 {offsets = [2, 0], sizes = [16, 32], strides = [1, 1]} : vector<20x32xf32> to vector<16x32xf32>
    %51 = arith.mulf %43, %49 : vector<16x32xf32>
    %52 = arith.addf %51, %50 : vector<16x32xf32>
    %cst_37 = arith.constant 0.707106769 : f32
    %53 = vector.broadcast %cst_37 : f32 to vector<16x32xf32>
    %54 = arith.mulf %52, %53 : vector<16x32xf32>
    %c2_38 = arith.constant 2 : index
    %c0_39 = arith.constant 0 : index
    %55 = vector.load %arg8[%c2_38, %c0_39] : memref<20x32xf32, #tpu.memory_space<vmem>>, vector<16x32xf32>
    tpu.vector_store %arg8[%c2_38, %c0_39], %54 {strides = array<i32>} : memref<20x32xf32, #tpu.memory_space<vmem>>, vector<16x32xf32>,
    %c0_40 = arith.constant 0 : index
    %c0_41 = arith.constant 0 : index
    %56 = vector.load %arg8[%c0_40, %c0_41] : memref<20x32xf32, #tpu.memory_space<vmem>>, vector<20x32xf32>
    %57 = vector.extract_strided_slice %7 {offsets = [1, 0], sizes = [1, 64], strides = [1, 1]} : vector<7x64xf32> to vector<1x64xf32>
    %58 = vector.shape_cast %57 : vector<1x64xf32> to vector<1x64xf32>
    %59 = vector.broadcast %58 : vector<1x64xf32> to vector<16x64xf32>
    %60 = vector.extract_strided_slice %56 {offsets = [0, 0], sizes = [16, 32], strides = [1, 1]} : vector<20x32xf32> to vector<16x32xf32>
    %c1_42 = arith.constant 1 : index
    %c0_43 = arith.constant 0 : index
    %c0_44 = arith.constant 0 : index
    %c0_45 = arith.constant 0 : index
    %61 = vector.load %arg2[%c1_42, %c0_43, %c0_44, %c0_45] : memref<7x5x32x64xf32, #tpu.memory_space<vmem>>, vector<1x1x32x64xf32>
    %62 = vector.shape_cast %61 : vector<1x1x32x64xf32> to vector<32x64xf32>
    %cst_46 = arith.constant dense<0.000000e+00> : vector<16x64xf32>
    %63 = tpu.matmul %60, %62, %cst_46 {dimension_numbers = #tpu.dot_dimension_numbers<[1], [0], [0], [1], [0, 0, 1, 1], [], []>} : vector<16x32xf32>, vector<32x64xf32>, vector<16x64xf32> -> vector<16x64xf32>
    %64 = arith.addf %59, %63 : vector<16x64xf32>
    %65 = vector.extract_strided_slice %56 {offsets = [1, 0], sizes = [16, 32], strides = [1, 1]} : vector<20x32xf32> to vector<16x32xf32>
    %c1_47 = arith.constant 1 : index
    %c1_48 = arith.constant 1 : index
    %c0_49 = arith.constant 0 : index
    %c0_50 = arith.constant 0 : index
    %66 = vector.load %arg2[%c1_47, %c1_48, %c0_49, %c0_50] : memref<7x5x32x64xf32, #tpu.memory_space<vmem>>, vector<1x1x32x64xf32>
    %67 = vector.shape_cast %66 : vector<1x1x32x64xf32> to vector<32x64xf32>
    %cst_51 = arith.constant dense<0.000000e+00> : vector<16x64xf32>
    %68 = tpu.matmul %65, %67, %cst_51 {dimension_numbers = #tpu.dot_dimension_numbers<[1], [0], [0], [1], [0, 0, 1, 1], [], []>} : vector<16x32xf32>, vector<32x64xf32>, vector<16x64xf32> -> vector<16x64xf32>
    %69 = arith.addf %64, %68 : vector<16x64xf32>
    %70 = vector.extract_strided_slice %56 {offsets = [2, 0], sizes = [16, 32], strides = [1, 1]} : vector<20x32xf32> to vector<16x32xf32>
    %c1_52 = arith.constant 1 : index
    %c2_53 = arith.constant 2 : index
    %c0_54 = arith.constant 0 : index
    %c0_55 = arith.constant 0 : index
    %71 = vector.load %arg2[%c1_52, %c2_53, %c0_54, %c0_55] : memref<7x5x32x64xf32, #tpu.memory_space<vmem>>, vector<1x1x32x64xf32>
    %72 = vector.shape_cast %71 : vector<1x1x32x64xf32> to vector<32x64xf32>
    %cst_56 = arith.constant dense<0.000000e+00> : vector<16x64xf32>
    %73 = tpu.matmul %70, %72, %cst_56 {dimension_numbers = #tpu.dot_dimension_numbers<[1], [0], [0], [1], [0, 0, 1, 1], [], []>} : vector<16x32xf32>, vector<32x64xf32>, vector<16x64xf32> -> vector<16x64xf32>
    %74 = arith.addf %69, %73 : vector<16x64xf32>
    %75 = vector.extract_strided_slice %56 {offsets = [3, 0], sizes = [16, 32], strides = [1, 1]} : vector<20x32xf32> to vector<16x32xf32>
    %c1_57 = arith.constant 1 : index
    %c3_58 = arith.constant 3 : index
    %c0_59 = arith.constant 0 : index
    %c0_60 = arith.constant 0 : index
    %76 = vector.load %arg2[%c1_57, %c3_58, %c0_59, %c0_60] : memref<7x5x32x64xf32, #tpu.memory_space<vmem>>, vector<1x1x32x64xf32>
    %77 = vector.shape_cast %76 : vector<1x1x32x64xf32> to vector<32x64xf32>
    %cst_61 = arith.constant dense<0.000000e+00> : vector<16x64xf32>
    %78 = tpu.matmul %75, %77, %cst_61 {dimension_numbers = #tpu.dot_dimension_numbers<[1], [0], [0], [1], [0, 0, 1, 1], [], []>} : vector<16x32xf32>, vector<32x64xf32>, vector<16x64xf32> -> vector<16x64xf32>
    %79 = arith.addf %74, %78 : vector<16x64xf32>
    %80 = vector.extract_strided_slice %56 {offsets = [4, 0], sizes = [16, 32], strides = [1, 1]} : vector<20x32xf32> to vector<16x32xf32>
    %c1_62 = arith.constant 1 : index
    %c4_63 = arith.constant 4 : index
    %c0_64 = arith.constant 0 : index
    %c0_65 = arith.constant 0 : index
    %81 = vector.load %arg2[%c1_62, %c4_63, %c0_64, %c0_65] : memref<7x5x32x64xf32, #tpu.memory_space<vmem>>, vector<1x1x32x64xf32>
    %82 = vector.shape_cast %81 : vector<1x1x32x64xf32> to vector<32x64xf32>
    %cst_66 = arith.constant dense<0.000000e+00> : vector<16x64xf32>
    %83 = tpu.matmul %80, %82, %cst_66 {dimension_numbers = #tpu.dot_dimension_numbers<[1], [0], [0], [1], [0, 0, 1, 1], [], []>} : vector<16x32xf32>, vector<32x64xf32>, vector<16x64xf32> -> vector<16x64xf32>
    %84 = arith.addf %79, %83 : vector<16x64xf32>
    %85 = vector.extract_strided_slice %84 {offsets = [0, 0], sizes = [16, 32], strides = [1, 1]} : vector<16x64xf32> to vector<16x32xf32>
    %86 = math.tanh %85 : vector<16x32xf32>
    %87 = vector.extract_strided_slice %9 {offsets = [1, 0], sizes = [1, 32], strides = [1, 1]} : vector<7x32xf32> to vector<1x32xf32>
    %88 = vector.broadcast %87 : vector<1x32xf32> to vector<16x32xf32>
    %89 = arith.addf %86, %88 : vector<16x32xf32>
    %90 = vector.extract_strided_slice %84 {offsets = [0, 32], sizes = [16, 32], strides = [1, 1]} : vector<16x64xf32> to vector<16x32xf32>
    %91 = arith.negf %90 : vector<16x32xf32>
    %92 = math.exp %91 : vector<16x32xf32>
    %cst_67 = arith.constant 1.000000e+00 : f32
    %93 = vector.broadcast %cst_67 : f32 to vector<16x32xf32>
    %94 = arith.addf %93, %92 : vector<16x32xf32>
    %95 = arith.divf %93, %94 : vector<16x32xf32>
    %96 = vector.extract_strided_slice %56 {offsets = [2, 0], sizes = [16, 32], strides = [1, 1]} : vector<20x32xf32> to vector<16x32xf32>
    %97 = arith.mulf %89, %95 : vector<16x32xf32>
    %98 = arith.addf %97, %96 : vector<16x32xf32>
    %cst_68 = arith.constant 0.707106769 : f32
    %99 = vector.broadcast %cst_68 : f32 to vector<16x32xf32>
    %100 = arith.mulf %98, %99 : vector<16x32xf32>
    %c2_69 = arith.constant 2 : index
    %c0_70 = arith.constant 0 : index
    %101 = vector.load %arg8[%c2_69, %c0_70] : memref<20x32xf32, #tpu.memory_space<vmem>>, vector<16x32xf32>
    tpu.vector_store %arg8[%c2_69, %c0_70], %100 {strides = array<i32>} : memref<20x32xf32, #tpu.memory_space<vmem>>, vector<16x32xf32>,
    %c0_71 = arith.constant 0 : index
    %c0_72 = arith.constant 0 : index
    %102 = vector.load %arg8[%c0_71, %c0_72] : memref<20x32xf32, #tpu.memory_space<vmem>>, vector<20x32xf32>
    %103 = vector.extract_strided_slice %7 {offsets = [2, 0], sizes = [1, 64], strides = [1, 1]} : vector<7x64xf32> to vector<1x64xf32>
    %104 = vector.shape_cast %103 : vector<1x64xf32> to vector<1x64xf32>
    %105 = vector.broadcast %104 : vector<1x64xf32> to vector<16x64xf32>
    %106 = vector.extract_strided_slice %102 {offsets = [0, 0], sizes = [16, 32], strides = [1, 1]} : vector<20x32xf32> to vector<16x32xf32>
    %c2_73 = arith.constant 2 : index
    %c0_74 = arith.constant 0 : index
    %c0_75 = arith.constant 0 : index
    %c0_76 = arith.constant 0 : index
    %107 = vector.load %arg2[%c2_73, %c0_74, %c0_75, %c0_76] : memref<7x5x32x64xf32, #tpu.memory_space<vmem>>, vector<1x1x32x64xf32>
    %108 = vector.shape_cast %107 : vector<1x1x32x64xf32> to vector<32x64xf32>
    %cst_77 = arith.constant dense<0.000000e+00> : vector<16x64xf32>
    %109 = tpu.matmul %106, %108, %cst_77 {dimension_numbers = #tpu.dot_dimension_numbers<[1], [0], [0], [1], [0, 0, 1, 1], [], []>} : vector<16x32xf32>, vector<32x64xf32>, vector<16x64xf32> -> vector<16x64xf32>
    %110 = arith.addf %105, %109 : vector<16x64xf32>
    %111 = vector.extract_strided_slice %102 {offsets = [1, 0], sizes = [16, 32], strides = [1, 1]} : vector<20x32xf32> to vector<16x32xf32>
    %c2_78 = arith.constant 2 : index
    %c1_79 = arith.constant 1 : index
    %c0_80 = arith.constant 0 : index
    %c0_81 = arith.constant 0 : index
    %112 = vector.load %arg2[%c2_78, %c1_79, %c0_80, %c0_81] : memref<7x5x32x64xf32, #tpu.memory_space<vmem>>, vector<1x1x32x64xf32>
    %113 = vector.shape_cast %112 : vector<1x1x32x64xf32> to vector<32x64xf32>
    %cst_82 = arith.constant dense<0.000000e+00> : vector<16x64xf32>
    %114 = tpu.matmul %111, %113, %cst_82 {dimension_numbers = #tpu.dot_dimension_numbers<[1], [0], [0], [1], [0, 0, 1, 1], [], []>} : vector<16x32xf32>, vector<32x64xf32>, vector<16x64xf32> -> vector<16x64xf32>
    %115 = arith.addf %110, %114 : vector<16x64xf32>
    %116 = vector.extract_strided_slice %102 {offsets = [2, 0], sizes = [16, 32], strides = [1, 1]} : vector<20x32xf32> to vector<16x32xf32>
    %c2_83 = arith.constant 2 : index
    %c2_84 = arith.constant 2 : index
    %c0_85 = arith.constant 0 : index
    %c0_86 = arith.constant 0 : index
    %117 = vector.load %arg2[%c2_83, %c2_84, %c0_85, %c0_86] : memref<7x5x32x64xf32, #tpu.memory_space<vmem>>, vector<1x1x32x64xf32>
    %118 = vector.shape_cast %117 : vector<1x1x32x64xf32> to vector<32x64xf32>
    %cst_87 = arith.constant dense<0.000000e+00> : vector<16x64xf32>
    %119 = tpu.matmul %116, %118, %cst_87 {dimension_numbers = #tpu.dot_dimension_numbers<[1], [0], [0], [1], [0, 0, 1, 1], [], []>} : vector<16x32xf32>, vector<32x64xf32>, vector<16x64xf32> -> vector<16x64xf32>
    %120 = arith.addf %115, %119 : vector<16x64xf32>
    %121 = vector.extract_strided_slice %102 {offsets = [3, 0], sizes = [16, 32], strides = [1, 1]} : vector<20x32xf32> to vector<16x32xf32>
    %c2_88 = arith.constant 2 : index
    %c3_89 = arith.constant 3 : index
    %c0_90 = arith.constant 0 : index
    %c0_91 = arith.constant 0 : index
    %122 = vector.load %arg2[%c2_88, %c3_89, %c0_90, %c0_91] : memref<7x5x32x64xf32, #tpu.memory_space<vmem>>, vector<1x1x32x64xf32>
    %123 = vector.shape_cast %122 : vector<1x1x32x64xf32> to vector<32x64xf32>
    %cst_92 = arith.constant dense<0.000000e+00> : vector<16x64xf32>
    %124 = tpu.matmul %121, %123, %cst_92 {dimension_numbers = #tpu.dot_dimension_numbers<[1], [0], [0], [1], [0, 0, 1, 1], [], []>} : vector<16x32xf32>, vector<32x64xf32>, vector<16x64xf32> -> vector<16x64xf32>
    %125 = arith.addf %120, %124 : vector<16x64xf32>
    %126 = vector.extract_strided_slice %102 {offsets = [4, 0], sizes = [16, 32], strides = [1, 1]} : vector<20x32xf32> to vector<16x32xf32>
    %c2_93 = arith.constant 2 : index
    %c4_94 = arith.constant 4 : index
    %c0_95 = arith.constant 0 : index
    %c0_96 = arith.constant 0 : index
    %127 = vector.load %arg2[%c2_93, %c4_94, %c0_95, %c0_96] : memref<7x5x32x64xf32, #tpu.memory_space<vmem>>, vector<1x1x32x64xf32>
    %128 = vector.shape_cast %127 : vector<1x1x32x64xf32> to vector<32x64xf32>
    %cst_97 = arith.constant dense<0.000000e+00> : vector<16x64xf32>
    %129 = tpu.matmul %126, %128, %cst_97 {dimension_numbers = #tpu.dot_dimension_numbers<[1], [0], [0], [1], [0, 0, 1, 1], [], []>} : vector<16x32xf32>, vector<32x64xf32>, vector<16x64xf32> -> vector<16x64xf32>
    %130 = arith.addf %125, %129 : vector<16x64xf32>
    %131 = vector.extract_strided_slice %130 {offsets = [0, 0], sizes = [16, 32], strides = [1, 1]} : vector<16x64xf32> to vector<16x32xf32>
    %132 = math.tanh %131 : vector<16x32xf32>
    %133 = vector.extract_strided_slice %9 {offsets = [2, 0], sizes = [1, 32], strides = [1, 1]} : vector<7x32xf32> to vector<1x32xf32>
    %134 = vector.broadcast %133 : vector<1x32xf32> to vector<16x32xf32>
    %135 = arith.addf %132, %134 : vector<16x32xf32>
    %136 = vector.extract_strided_slice %130 {offsets = [0, 32], sizes = [16, 32], strides = [1, 1]} : vector<16x64xf32> to vector<16x32xf32>
    %137 = arith.negf %136 : vector<16x32xf32>
    %138 = math.exp %137 : vector<16x32xf32>
    %cst_98 = arith.constant 1.000000e+00 : f32
    %139 = vector.broadcast %cst_98 : f32 to vector<16x32xf32>
    %140 = arith.addf %139, %138 : vector<16x32xf32>
    %141 = arith.divf %139, %140 : vector<16x32xf32>
    %142 = vector.extract_strided_slice %102 {offsets = [2, 0], sizes = [16, 32], strides = [1, 1]} : vector<20x32xf32> to vector<16x32xf32>
    %143 = arith.mulf %135, %141 : vector<16x32xf32>
    %144 = arith.addf %143, %142 : vector<16x32xf32>
    %cst_99 = arith.constant 0.707106769 : f32
    %145 = vector.broadcast %cst_99 : f32 to vector<16x32xf32>
    %146 = arith.mulf %144, %145 : vector<16x32xf32>
    %c2_100 = arith.constant 2 : index
    %c0_101 = arith.constant 0 : index
    %147 = vector.load %arg8[%c2_100, %c0_101] : memref<20x32xf32, #tpu.memory_space<vmem>>, vector<16x32xf32>
    tpu.vector_store %arg8[%c2_100, %c0_101], %146 {strides = array<i32>} : memref<20x32xf32, #tpu.memory_space<vmem>>, vector<16x32xf32>,
    %c0_102 = arith.constant 0 : index
    %c0_103 = arith.constant 0 : index
    %148 = vector.load %arg8[%c0_102, %c0_103] : memref<20x32xf32, #tpu.memory_space<vmem>>, vector<20x32xf32>
    %149 = vector.extract_strided_slice %7 {offsets = [3, 0], sizes = [1, 64], strides = [1, 1]} : vector<7x64xf32> to vector<1x64xf32>
    %150 = vector.shape_cast %149 : vector<1x64xf32> to vector<1x64xf32>
    %151 = vector.broadcast %150 : vector<1x64xf32> to vector<16x64xf32>
    %152 = vector.extract_strided_slice %148 {offsets = [0, 0], sizes = [16, 32], strides = [1, 1]} : vector<20x32xf32> to vector<16x32xf32>
    %c3_104 = arith.constant 3 : index
    %c0_105 = arith.constant 0 : index
    %c0_106 = arith.constant 0 : index
    %c0_107 = arith.constant 0 : index
    %153 = vector.load %arg2[%c3_104, %c0_105, %c0_106, %c0_107] : memref<7x5x32x64xf32, #tpu.memory_space<vmem>>, vector<1x1x32x64xf32>
    %154 = vector.shape_cast %153 : vector<1x1x32x64xf32> to vector<32x64xf32>
    %cst_108 = arith.constant dense<0.000000e+00> : vector<16x64xf32>
    %155 = tpu.matmul %152, %154, %cst_108 {dimension_numbers = #tpu.dot_dimension_numbers<[1], [0], [0], [1], [0, 0, 1, 1], [], []>} : vector<16x32xf32>, vector<32x64xf32>, vector<16x64xf32> -> vector<16x64xf32>
    %156 = arith.addf %151, %155 : vector<16x64xf32>
    %157 = vector.extract_strided_slice %148 {offsets = [1, 0], sizes = [16, 32], strides = [1, 1]} : vector<20x32xf32> to vector<16x32xf32>
    %c3_109 = arith.constant 3 : index
    %c1_110 = arith.constant 1 : index
    %c0_111 = arith.constant 0 : index
    %c0_112 = arith.constant 0 : index
    %158 = vector.load %arg2[%c3_109, %c1_110, %c0_111, %c0_112] : memref<7x5x32x64xf32, #tpu.memory_space<vmem>>, vector<1x1x32x64xf32>
    %159 = vector.shape_cast %158 : vector<1x1x32x64xf32> to vector<32x64xf32>
    %cst_113 = arith.constant dense<0.000000e+00> : vector<16x64xf32>
    %160 = tpu.matmul %157, %159, %cst_113 {dimension_numbers = #tpu.dot_dimension_numbers<[1], [0], [0], [1], [0, 0, 1, 1], [], []>} : vector<16x32xf32>, vector<32x64xf32>, vector<16x64xf32> -> vector<16x64xf32>
    %161 = arith.addf %156, %160 : vector<16x64xf32>
    %162 = vector.extract_strided_slice %148 {offsets = [2, 0], sizes = [16, 32], strides = [1, 1]} : vector<20x32xf32> to vector<16x32xf32>
    %c3_114 = arith.constant 3 : index
    %c2_115 = arith.constant 2 : index
    %c0_116 = arith.constant 0 : index
    %c0_117 = arith.constant 0 : index
    %163 = vector.load %arg2[%c3_114, %c2_115, %c0_116, %c0_117] : memref<7x5x32x64xf32, #tpu.memory_space<vmem>>, vector<1x1x32x64xf32>
    %164 = vector.shape_cast %163 : vector<1x1x32x64xf32> to vector<32x64xf32>
    %cst_118 = arith.constant dense<0.000000e+00> : vector<16x64xf32>
    %165 = tpu.matmul %162, %164, %cst_118 {dimension_numbers = #tpu.dot_dimension_numbers<[1], [0], [0], [1], [0, 0, 1, 1], [], []>} : vector<16x32xf32>, vector<32x64xf32>, vector<16x64xf32> -> vector<16x64xf32>
    %166 = arith.addf %161, %165 : vector<16x64xf32>
    %167 = vector.extract_strided_slice %148 {offsets = [3, 0], sizes = [16, 32], strides = [1, 1]} : vector<20x32xf32> to vector<16x32xf32>
    %c3_119 = arith.constant 3 : index
    %c3_120 = arith.constant 3 : index
    %c0_121 = arith.constant 0 : index
    %c0_122 = arith.constant 0 : index
    %168 = vector.load %arg2[%c3_119, %c3_120, %c0_121, %c0_122] : memref<7x5x32x64xf32, #tpu.memory_space<vmem>>, vector<1x1x32x64xf32>
    %169 = vector.shape_cast %168 : vector<1x1x32x64xf32> to vector<32x64xf32>
    %cst_123 = arith.constant dense<0.000000e+00> : vector<16x64xf32>
    %170 = tpu.matmul %167, %169, %cst_123 {dimension_numbers = #tpu.dot_dimension_numbers<[1], [0], [0], [1], [0, 0, 1, 1], [], []>} : vector<16x32xf32>, vector<32x64xf32>, vector<16x64xf32> -> vector<16x64xf32>
    %171 = arith.addf %166, %170 : vector<16x64xf32>
    %172 = vector.extract_strided_slice %148 {offsets = [4, 0], sizes = [16, 32], strides = [1, 1]} : vector<20x32xf32> to vector<16x32xf32>
    %c3_124 = arith.constant 3 : index
    %c4_125 = arith.constant 4 : index
    %c0_126 = arith.constant 0 : index
    %c0_127 = arith.constant 0 : index
    %173 = vector.load %arg2[%c3_124, %c4_125, %c0_126, %c0_127] : memref<7x5x32x64xf32, #tpu.memory_space<vmem>>, vector<1x1x32x64xf32>
    %174 = vector.shape_cast %173 : vector<1x1x32x64xf32> to vector<32x64xf32>
    %cst_128 = arith.constant dense<0.000000e+00> : vector<16x64xf32>
    %175 = tpu.matmul %172, %174, %cst_128 {dimension_numbers = #tpu.dot_dimension_numbers<[1], [0], [0], [1], [0, 0, 1, 1], [], []>} : vector<16x32xf32>, vector<32x64xf32>, vector<16x64xf32> -> vector<16x64xf32>
    %176 = arith.addf %171, %175 : vector<16x64xf32>
    %177 = vector.extract_strided_slice %176 {offsets = [0, 0], sizes = [16, 32], strides = [1, 1]} : vector<16x64xf32> to vector<16x32xf32>
    %178 = math.tanh %177 : vector<16x32xf32>
    %179 = vector.extract_strided_slice %9 {offsets = [3, 0], sizes = [1, 32], strides = [1, 1]} : vector<7x32xf32> to vector<1x32xf32>
    %180 = vector.broadcast %179 : vector<1x32xf32> to vector<16x32xf32>
    %181 = arith.addf %178, %180 : vector<16x32xf32>
    %182 = vector.extract_strided_slice %176 {offsets = [0, 32], sizes = [16, 32], strides = [1, 1]} : vector<16x64xf32> to vector<16x32xf32>
    %183 = arith.negf %182 : vector<16x32xf32>
    %184 = math.exp %183 : vector<16x32xf32>
    %cst_129 = arith.constant 1.000000e+00 : f32
    %185 = vector.broadcast %cst_129 : f32 to vector<16x32xf32>
    %186 = arith.addf %185, %184 : vector<16x32xf32>
    %187 = arith.divf %185, %186 : vector<16x32xf32>
    %188 = vector.extract_strided_slice %148 {offsets = [2, 0], sizes = [16, 32], strides = [1, 1]} : vector<20x32xf32> to vector<16x32xf32>
    %189 = arith.mulf %181, %187 : vector<16x32xf32>
    %190 = arith.addf %189, %188 : vector<16x32xf32>
    %cst_130 = arith.constant 0.707106769 : f32
    %191 = vector.broadcast %cst_130 : f32 to vector<16x32xf32>
    %192 = arith.mulf %190, %191 : vector<16x32xf32>
    %c2_131 = arith.constant 2 : index
    %c0_132 = arith.constant 0 : index
    %193 = vector.load %arg8[%c2_131, %c0_132] : memref<20x32xf32, #tpu.memory_space<vmem>>, vector<16x32xf32>
    tpu.vector_store %arg8[%c2_131, %c0_132], %192 {strides = array<i32>} : memref<20x32xf32, #tpu.memory_space<vmem>>, vector<16x32xf32>,
    %c0_133 = arith.constant 0 : index
    %c0_134 = arith.constant 0 : index
    %194 = vector.load %arg8[%c0_133, %c0_134] : memref<20x32xf32, #tpu.memory_space<vmem>>, vector<20x32xf32>
    %195 = vector.extract_strided_slice %7 {offsets = [4, 0], sizes = [1, 64], strides = [1, 1]} : vector<7x64xf32> to vector<1x64xf32>
    %196 = vector.shape_cast %195 : vector<1x64xf32> to vector<1x64xf32>
    %197 = vector.broadcast %196 : vector<1x64xf32> to vector<16x64xf32>
    %198 = vector.extract_strided_slice %194 {offsets = [0, 0], sizes = [16, 32], strides = [1, 1]} : vector<20x32xf32> to vector<16x32xf32>
    %c4_135 = arith.constant 4 : index
    %c0_136 = arith.constant 0 : index
    %c0_137 = arith.constant 0 : index
    %c0_138 = arith.constant 0 : index
    %199 = vector.load %arg2[%c4_135, %c0_136, %c0_137, %c0_138] : memref<7x5x32x64xf32, #tpu.memory_space<vmem>>, vector<1x1x32x64xf32>
    %200 = vector.shape_cast %199 : vector<1x1x32x64xf32> to vector<32x64xf32>
    %cst_139 = arith.constant dense<0.000000e+00> : vector<16x64xf32>
    %201 = tpu.matmul %198, %200, %cst_139 {dimension_numbers = #tpu.dot_dimension_numbers<[1], [0], [0], [1], [0, 0, 1, 1], [], []>} : vector<16x32xf32>, vector<32x64xf32>, vector<16x64xf32> -> vector<16x64xf32>
    %202 = arith.addf %197, %201 : vector<16x64xf32>
    %203 = vector.extract_strided_slice %194 {offsets = [1, 0], sizes = [16, 32], strides = [1, 1]} : vector<20x32xf32> to vector<16x32xf32>
    %c4_140 = arith.constant 4 : index
    %c1_141 = arith.constant 1 : index
    %c0_142 = arith.constant 0 : index
    %c0_143 = arith.constant 0 : index
    %204 = vector.load %arg2[%c4_140, %c1_141, %c0_142, %c0_143] : memref<7x5x32x64xf32, #tpu.memory_space<vmem>>, vector<1x1x32x64xf32>
    %205 = vector.shape_cast %204 : vector<1x1x32x64xf32> to vector<32x64xf32>
    %cst_144 = arith.constant dense<0.000000e+00> : vector<16x64xf32>
    %206 = tpu.matmul %203, %205, %cst_144 {dimension_numbers = #tpu.dot_dimension_numbers<[1], [0], [0], [1], [0, 0, 1, 1], [], []>} : vector<16x32xf32>, vector<32x64xf32>, vector<16x64xf32> -> vector<16x64xf32>
    %207 = arith.addf %202, %206 : vector<16x64xf32>
    %208 = vector.extract_strided_slice %194 {offsets = [2, 0], sizes = [16, 32], strides = [1, 1]} : vector<20x32xf32> to vector<16x32xf32>
    %c4_145 = arith.constant 4 : index
    %c2_146 = arith.constant 2 : index
    %c0_147 = arith.constant 0 : index
    %c0_148 = arith.constant 0 : index
    %209 = vector.load %arg2[%c4_145, %c2_146, %c0_147, %c0_148] : memref<7x5x32x64xf32, #tpu.memory_space<vmem>>, vector<1x1x32x64xf32>
    %210 = vector.shape_cast %209 : vector<1x1x32x64xf32> to vector<32x64xf32>
    %cst_149 = arith.constant dense<0.000000e+00> : vector<16x64xf32>
    %211 = tpu.matmul %208, %210, %cst_149 {dimension_numbers = #tpu.dot_dimension_numbers<[1], [0], [0], [1], [0, 0, 1, 1], [], []>} : vector<16x32xf32>, vector<32x64xf32>, vector<16x64xf32> -> vector<16x64xf32>
    %212 = arith.addf %207, %211 : vector<16x64xf32>
    %213 = vector.extract_strided_slice %194 {offsets = [3, 0], sizes = [16, 32], strides = [1, 1]} : vector<20x32xf32> to vector<16x32xf32>
    %c4_150 = arith.constant 4 : index
    %c3_151 = arith.constant 3 : index
    %c0_152 = arith.constant 0 : index
    %c0_153 = arith.constant 0 : index
    %214 = vector.load %arg2[%c4_150, %c3_151, %c0_152, %c0_153] : memref<7x5x32x64xf32, #tpu.memory_space<vmem>>, vector<1x1x32x64xf32>
    %215 = vector.shape_cast %214 : vector<1x1x32x64xf32> to vector<32x64xf32>
    %cst_154 = arith.constant dense<0.000000e+00> : vector<16x64xf32>
    %216 = tpu.matmul %213, %215, %cst_154 {dimension_numbers = #tpu.dot_dimension_numbers<[1], [0], [0], [1], [0, 0, 1, 1], [], []>} : vector<16x32xf32>, vector<32x64xf32>, vector<16x64xf32> -> vector<16x64xf32>
    %217 = arith.addf %212, %216 : vector<16x64xf32>
    %218 = vector.extract_strided_slice %194 {offsets = [4, 0], sizes = [16, 32], strides = [1, 1]} : vector<20x32xf32> to vector<16x32xf32>
    %c4_155 = arith.constant 4 : index
    %c4_156 = arith.constant 4 : index
    %c0_157 = arith.constant 0 : index
    %c0_158 = arith.constant 0 : index
    %219 = vector.load %arg2[%c4_155, %c4_156, %c0_157, %c0_158] : memref<7x5x32x64xf32, #tpu.memory_space<vmem>>, vector<1x1x32x64xf32>
    %220 = vector.shape_cast %219 : vector<1x1x32x64xf32> to vector<32x64xf32>
    %cst_159 = arith.constant dense<0.000000e+00> : vector<16x64xf32>
    %221 = tpu.matmul %218, %220, %cst_159 {dimension_numbers = #tpu.dot_dimension_numbers<[1], [0], [0], [1], [0, 0, 1, 1], [], []>} : vector<16x32xf32>, vector<32x64xf32>, vector<16x64xf32> -> vector<16x64xf32>
    %222 = arith.addf %217, %221 : vector<16x64xf32>
    %223 = vector.extract_strided_slice %222 {offsets = [0, 0], sizes = [16, 32], strides = [1, 1]} : vector<16x64xf32> to vector<16x32xf32>
    %224 = math.tanh %223 : vector<16x32xf32>
    %225 = vector.extract_strided_slice %9 {offsets = [4, 0], sizes = [1, 32], strides = [1, 1]} : vector<7x32xf32> to vector<1x32xf32>
    %226 = vector.broadcast %225 : vector<1x32xf32> to vector<16x32xf32>
    %227 = arith.addf %224, %226 : vector<16x32xf32>
    %228 = vector.extract_strided_slice %222 {offsets = [0, 32], sizes = [16, 32], strides = [1, 1]} : vector<16x64xf32> to vector<16x32xf32>
    %229 = arith.negf %228 : vector<16x32xf32>
    %230 = math.exp %229 : vector<16x32xf32>
    %cst_160 = arith.constant 1.000000e+00 : f32
    %231 = vector.broadcast %cst_160 : f32 to vector<16x32xf32>
    %232 = arith.addf %231, %230 : vector<16x32xf32>
    %233 = arith.divf %231, %232 : vector<16x32xf32>
    %234 = vector.extract_strided_slice %194 {offsets = [2, 0], sizes = [16, 32], strides = [1, 1]} : vector<20x32xf32> to vector<16x32xf32>
    %235 = arith.mulf %227, %233 : vector<16x32xf32>
    %236 = arith.addf %235, %234 : vector<16x32xf32>
    %cst_161 = arith.constant 0.707106769 : f32
    %237 = vector.broadcast %cst_161 : f32 to vector<16x32xf32>
    %238 = arith.mulf %236, %237 : vector<16x32xf32>
    %c2_162 = arith.constant 2 : index
    %c0_163 = arith.constant 0 : index
    %239 = vector.load %arg8[%c2_162, %c0_163] : memref<20x32xf32, #tpu.memory_space<vmem>>, vector<16x32xf32>
    tpu.vector_store %arg8[%c2_162, %c0_163], %238 {strides = array<i32>} : memref<20x32xf32, #tpu.memory_space<vmem>>, vector<16x32xf32>,
    %c0_164 = arith.constant 0 : index
    %c0_165 = arith.constant 0 : index
    %240 = vector.load %arg8[%c0_164, %c0_165] : memref<20x32xf32, #tpu.memory_space<vmem>>, vector<20x32xf32>
    %241 = vector.extract_strided_slice %7 {offsets = [5, 0], sizes = [1, 64], strides = [1, 1]} : vector<7x64xf32> to vector<1x64xf32>
    %242 = vector.shape_cast %241 : vector<1x64xf32> to vector<1x64xf32>
    %243 = vector.broadcast %242 : vector<1x64xf32> to vector<16x64xf32>
    %244 = vector.extract_strided_slice %240 {offsets = [0, 0], sizes = [16, 32], strides = [1, 1]} : vector<20x32xf32> to vector<16x32xf32>
    %c5 = arith.constant 5 : index
    %c0_166 = arith.constant 0 : index
    %c0_167 = arith.constant 0 : index
    %c0_168 = arith.constant 0 : index
    %245 = vector.load %arg2[%c5, %c0_166, %c0_167, %c0_168] : memref<7x5x32x64xf32, #tpu.memory_space<vmem>>, vector<1x1x32x64xf32>
    %246 = vector.shape_cast %245 : vector<1x1x32x64xf32> to vector<32x64xf32>
    %cst_169 = arith.constant dense<0.000000e+00> : vector<16x64xf32>
    %247 = tpu.matmul %244, %246, %cst_169 {dimension_numbers = #tpu.dot_dimension_numbers<[1], [0], [0], [1], [0, 0, 1, 1], [], []>} : vector<16x32xf32>, vector<32x64xf32>, vector<16x64xf32> -> vector<16x64xf32>
    %248 = arith.addf %243, %247 : vector<16x64xf32>
    %249 = vector.extract_strided_slice %240 {offsets = [1, 0], sizes = [16, 32], strides = [1, 1]} : vector<20x32xf32> to vector<16x32xf32>
    %c5_170 = arith.constant 5 : index
    %c1_171 = arith.constant 1 : index
    %c0_172 = arith.constant 0 : index
    %c0_173 = arith.constant 0 : index
    %250 = vector.load %arg2[%c5_170, %c1_171, %c0_172, %c0_173] : memref<7x5x32x64xf32, #tpu.memory_space<vmem>>, vector<1x1x32x64xf32>
    %251 = vector.shape_cast %250 : vector<1x1x32x64xf32> to vector<32x64xf32>
    %cst_174 = arith.constant dense<0.000000e+00> : vector<16x64xf32>
    %252 = tpu.matmul %249, %251, %cst_174 {dimension_numbers = #tpu.dot_dimension_numbers<[1], [0], [0], [1], [0, 0, 1, 1], [], []>} : vector<16x32xf32>, vector<32x64xf32>, vector<16x64xf32> -> vector<16x64xf32>
    %253 = arith.addf %248, %252 : vector<16x64xf32>
    %254 = vector.extract_strided_slice %240 {offsets = [2, 0], sizes = [16, 32], strides = [1, 1]} : vector<20x32xf32> to vector<16x32xf32>
    %c5_175 = arith.constant 5 : index
    %c2_176 = arith.constant 2 : index
    %c0_177 = arith.constant 0 : index
    %c0_178 = arith.constant 0 : index
    %255 = vector.load %arg2[%c5_175, %c2_176, %c0_177, %c0_178] : memref<7x5x32x64xf32, #tpu.memory_space<vmem>>, vector<1x1x32x64xf32>
    %256 = vector.shape_cast %255 : vector<1x1x32x64xf32> to vector<32x64xf32>
    %cst_179 = arith.constant dense<0.000000e+00> : vector<16x64xf32>
    %257 = tpu.matmul %254, %256, %cst_179 {dimension_numbers = #tpu.dot_dimension_numbers<[1], [0], [0], [1], [0, 0, 1, 1], [], []>} : vector<16x32xf32>, vector<32x64xf32>, vector<16x64xf32> -> vector<16x64xf32>
    %258 = arith.addf %253, %257 : vector<16x64xf32>
    %259 = vector.extract_strided_slice %240 {offsets = [3, 0], sizes = [16, 32], strides = [1, 1]} : vector<20x32xf32> to vector<16x32xf32>
    %c5_180 = arith.constant 5 : index
    %c3_181 = arith.constant 3 : index
    %c0_182 = arith.constant 0 : index
    %c0_183 = arith.constant 0 : index
    %260 = vector.load %arg2[%c5_180, %c3_181, %c0_182, %c0_183] : memref<7x5x32x64xf32, #tpu.memory_space<vmem>>, vector<1x1x32x64xf32>
    %261 = vector.shape_cast %260 : vector<1x1x32x64xf32> to vector<32x64xf32>
    %cst_184 = arith.constant dense<0.000000e+00> : vector<16x64xf32>
    %262 = tpu.matmul %259, %261, %cst_184 {dimension_numbers = #tpu.dot_dimension_numbers<[1], [0], [0], [1], [0, 0, 1, 1], [], []>} : vector<16x32xf32>, vector<32x64xf32>, vector<16x64xf32> -> vector<16x64xf32>
    %263 = arith.addf %258, %262 : vector<16x64xf32>
    %264 = vector.extract_strided_slice %240 {offsets = [4, 0], sizes = [16, 32], strides = [1, 1]} : vector<20x32xf32> to vector<16x32xf32>
    %c5_185 = arith.constant 5 : index
    %c4_186 = arith.constant 4 : index
    %c0_187 = arith.constant 0 : index
    %c0_188 = arith.constant 0 : index
    %265 = vector.load %arg2[%c5_185, %c4_186, %c0_187, %c0_188] : memref<7x5x32x64xf32, #tpu.memory_space<vmem>>, vector<1x1x32x64xf32>
    %266 = vector.shape_cast %265 : vector<1x1x32x64xf32> to vector<32x64xf32>
    %cst_189 = arith.constant dense<0.000000e+00> : vector<16x64xf32>
    %267 = tpu.matmul %264, %266, %cst_189 {dimension_numbers = #tpu.dot_dimension_numbers<[1], [0], [0], [1], [0, 0, 1, 1], [], []>} : vector<16x32xf32>, vector<32x64xf32>, vector<16x64xf32> -> vector<16x64xf32>
    %268 = arith.addf %263, %267 : vector<16x64xf32>
    %269 = vector.extract_strided_slice %268 {offsets = [0, 0], sizes = [16, 32], strides = [1, 1]} : vector<16x64xf32> to vector<16x32xf32>
    %270 = math.tanh %269 : vector<16x32xf32>
    %271 = vector.extract_strided_slice %9 {offsets = [5, 0], sizes = [1, 32], strides = [1, 1]} : vector<7x32xf32> to vector<1x32xf32>
    %272 = vector.broadcast %271 : vector<1x32xf32> to vector<16x32xf32>
    %273 = arith.addf %270, %272 : vector<16x32xf32>
    %274 = vector.extract_strided_slice %268 {offsets = [0, 32], sizes = [16, 32], strides = [1, 1]} : vector<16x64xf32> to vector<16x32xf32>
    %275 = arith.negf %274 : vector<16x32xf32>
    %276 = math.exp %275 : vector<16x32xf32>
    %cst_190 = arith.constant 1.000000e+00 : f32
    %277 = vector.broadcast %cst_190 : f32 to vector<16x32xf32>
    %278 = arith.addf %277, %276 : vector<16x32xf32>
    %279 = arith.divf %277, %278 : vector<16x32xf32>
    %280 = vector.extract_strided_slice %240 {offsets = [2, 0], sizes = [16, 32], strides = [1, 1]} : vector<20x32xf32> to vector<16x32xf32>
    %281 = arith.mulf %273, %279 : vector<16x32xf32>
    %282 = arith.addf %281, %280 : vector<16x32xf32>
    %cst_191 = arith.constant 0.707106769 : f32
    %283 = vector.broadcast %cst_191 : f32 to vector<16x32xf32>
    %284 = arith.mulf %282, %283 : vector<16x32xf32>
    %c2_192 = arith.constant 2 : index
    %c0_193 = arith.constant 0 : index
    %285 = vector.load %arg8[%c2_192, %c0_193] : memref<20x32xf32, #tpu.memory_space<vmem>>, vector<16x32xf32>
    tpu.vector_store %arg8[%c2_192, %c0_193], %284 {strides = array<i32>} : memref<20x32xf32, #tpu.memory_space<vmem>>, vector<16x32xf32>,
    %c0_194 = arith.constant 0 : index
    %c0_195 = arith.constant 0 : index
    %286 = vector.load %arg8[%c0_194, %c0_195] : memref<20x32xf32, #tpu.memory_space<vmem>>, vector<20x32xf32>
    %287 = vector.extract_strided_slice %7 {offsets = [6, 0], sizes = [1, 64], strides = [1, 1]} : vector<7x64xf32> to vector<1x64xf32>
    %288 = vector.shape_cast %287 : vector<1x64xf32> to vector<1x64xf32>
    %289 = vector.broadcast %288 : vector<1x64xf32> to vector<16x64xf32>
    %290 = vector.extract_strided_slice %286 {offsets = [0, 0], sizes = [16, 32], strides = [1, 1]} : vector<20x32xf32> to vector<16x32xf32>
    %c6 = arith.constant 6 : index
    %c0_196 = arith.constant 0 : index
    %c0_197 = arith.constant 0 : index
    %c0_198 = arith.constant 0 : index
    %291 = vector.load %arg2[%c6, %c0_196, %c0_197, %c0_198] : memref<7x5x32x64xf32, #tpu.memory_space<vmem>>, vector<1x1x32x64xf32>
    %292 = vector.shape_cast %291 : vector<1x1x32x64xf32> to vector<32x64xf32>
    %cst_199 = arith.constant dense<0.000000e+00> : vector<16x64xf32>
    %293 = tpu.matmul %290, %292, %cst_199 {dimension_numbers = #tpu.dot_dimension_numbers<[1], [0], [0], [1], [0, 0, 1, 1], [], []>} : vector<16x32xf32>, vector<32x64xf32>, vector<16x64xf32> -> vector<16x64xf32>
    %294 = arith.addf %289, %293 : vector<16x64xf32>
    %295 = vector.extract_strided_slice %286 {offsets = [1, 0], sizes = [16, 32], strides = [1, 1]} : vector<20x32xf32> to vector<16x32xf32>
    %c6_200 = arith.constant 6 : index
    %c1_201 = arith.constant 1 : index
    %c0_202 = arith.constant 0 : index
    %c0_203 = arith.constant 0 : index
    %296 = vector.load %arg2[%c6_200, %c1_201, %c0_202, %c0_203] : memref<7x5x32x64xf32, #tpu.memory_space<vmem>>, vector<1x1x32x64xf32>
    %297 = vector.shape_cast %296 : vector<1x1x32x64xf32> to vector<32x64xf32>
    %cst_204 = arith.constant dense<0.000000e+00> : vector<16x64xf32>
    %298 = tpu.matmul %295, %297, %cst_204 {dimension_numbers = #tpu.dot_dimension_numbers<[1], [0], [0], [1], [0, 0, 1, 1], [], []>} : vector<16x32xf32>, vector<32x64xf32>, vector<16x64xf32> -> vector<16x64xf32>
    %299 = arith.addf %294, %298 : vector<16x64xf32>
    %300 = vector.extract_strided_slice %286 {offsets = [2, 0], sizes = [16, 32], strides = [1, 1]} : vector<20x32xf32> to vector<16x32xf32>
    %c6_205 = arith.constant 6 : index
    %c2_206 = arith.constant 2 : index
    %c0_207 = arith.constant 0 : index
    %c0_208 = arith.constant 0 : index
    %301 = vector.load %arg2[%c6_205, %c2_206, %c0_207, %c0_208] : memref<7x5x32x64xf32, #tpu.memory_space<vmem>>, vector<1x1x32x64xf32>
    %302 = vector.shape_cast %301 : vector<1x1x32x64xf32> to vector<32x64xf32>
    %cst_209 = arith.constant dense<0.000000e+00> : vector<16x64xf32>
    %303 = tpu.matmul %300, %302, %cst_209 {dimension_numbers = #tpu.dot_dimension_numbers<[1], [0], [0], [1], [0, 0, 1, 1], [], []>} : vector<16x32xf32>, vector<32x64xf32>, vector<16x64xf32> -> vector<16x64xf32>
    %304 = arith.addf %299, %303 : vector<16x64xf32>
    %305 = vector.extract_strided_slice %286 {offsets = [3, 0], sizes = [16, 32], strides = [1, 1]} : vector<20x32xf32> to vector<16x32xf32>
    %c6_210 = arith.constant 6 : index
    %c3_211 = arith.constant 3 : index
    %c0_212 = arith.constant 0 : index
    %c0_213 = arith.constant 0 : index
    %306 = vector.load %arg2[%c6_210, %c3_211, %c0_212, %c0_213] : memref<7x5x32x64xf32, #tpu.memory_space<vmem>>, vector<1x1x32x64xf32>
    %307 = vector.shape_cast %306 : vector<1x1x32x64xf32> to vector<32x64xf32>
    %cst_214 = arith.constant dense<0.000000e+00> : vector<16x64xf32>
    %308 = tpu.matmul %305, %307, %cst_214 {dimension_numbers = #tpu.dot_dimension_numbers<[1], [0], [0], [1], [0, 0, 1, 1], [], []>} : vector<16x32xf32>, vector<32x64xf32>, vector<16x64xf32> -> vector<16x64xf32>
    %309 = arith.addf %304, %308 : vector<16x64xf32>
    %310 = vector.extract_strided_slice %286 {offsets = [4, 0], sizes = [16, 32], strides = [1, 1]} : vector<20x32xf32> to vector<16x32xf32>
    %c6_215 = arith.constant 6 : index
    %c4_216 = arith.constant 4 : index
    %c0_217 = arith.constant 0 : index
    %c0_218 = arith.constant 0 : index
    %311 = vector.load %arg2[%c6_215, %c4_216, %c0_217, %c0_218] : memref<7x5x32x64xf32, #tpu.memory_space<vmem>>, vector<1x1x32x64xf32>
    %312 = vector.shape_cast %311 : vector<1x1x32x64xf32> to vector<32x64xf32>
    %cst_219 = arith.constant dense<0.000000e+00> : vector<16x64xf32>
    %313 = tpu.matmul %310, %312, %cst_219 {dimension_numbers = #tpu.dot_dimension_numbers<[1], [0], [0], [1], [0, 0, 1, 1], [], []>} : vector<16x32xf32>, vector<32x64xf32>, vector<16x64xf32> -> vector<16x64xf32>
    %314 = arith.addf %309, %313 : vector<16x64xf32>
    %315 = vector.extract_strided_slice %314 {offsets = [0, 0], sizes = [16, 32], strides = [1, 1]} : vector<16x64xf32> to vector<16x32xf32>
    %316 = math.tanh %315 : vector<16x32xf32>
    %317 = vector.extract_strided_slice %9 {offsets = [6, 0], sizes = [1, 32], strides = [1, 1]} : vector<7x32xf32> to vector<1x32xf32>
    %318 = vector.broadcast %317 : vector<1x32xf32> to vector<16x32xf32>
    %319 = arith.addf %316, %318 : vector<16x32xf32>
    %320 = vector.extract_strided_slice %314 {offsets = [0, 32], sizes = [16, 32], strides = [1, 1]} : vector<16x64xf32> to vector<16x32xf32>
    %321 = arith.negf %320 : vector<16x32xf32>
    %322 = math.exp %321 : vector<16x32xf32>
    %cst_220 = arith.constant 1.000000e+00 : f32
    %323 = vector.broadcast %cst_220 : f32 to vector<16x32xf32>
    %324 = arith.addf %323, %322 : vector<16x32xf32>
    %325 = arith.divf %323, %324 : vector<16x32xf32>
    %326 = vector.extract_strided_slice %286 {offsets = [2, 0], sizes = [16, 32], strides = [1, 1]} : vector<20x32xf32> to vector<16x32xf32>
    %327 = arith.mulf %319, %325 : vector<16x32xf32>
    %328 = arith.addf %327, %326 : vector<16x32xf32>
    %cst_221 = arith.constant 0.707106769 : f32
    %329 = vector.broadcast %cst_221 : f32 to vector<16x32xf32>
    %330 = arith.mulf %328, %329 : vector<16x32xf32>
    %c2_222 = arith.constant 2 : index
    %c0_223 = arith.constant 0 : index
    %331 = vector.load %arg8[%c2_222, %c0_223] : memref<20x32xf32, #tpu.memory_space<vmem>>, vector<16x32xf32>
    tpu.vector_store %arg8[%c2_222, %c0_223], %330 {strides = array<i32>} : memref<20x32xf32, #tpu.memory_space<vmem>>, vector<16x32xf32>,
    %c2_224 = arith.constant 2 : index
    %c0_225 = arith.constant 0 : index
    %332 = vector.load %arg8[%c2_224, %c0_225] : memref<20x32xf32, #tpu.memory_space<vmem>>, vector<16x32xf32>
    %c0_226 = arith.constant 0 : index
    %c0_227 = arith.constant 0 : index
    %333 = vector.load %arg5[%c0_226, %c0_227] : memref<1x32xf32, #tpu.memory_space<vmem>>, vector<1x32xf32>
    %334 = vector.broadcast %333 : vector<1x32xf32> to vector<16x32xf32>
    %335 = arith.mulf %332, %334 : vector<16x32xf32>
    %cst_228 = arith.constant dense<0.000000e+00> : vector<16xf32>
    %336 = vector.multi_reduction <add>, %335, %cst_228 [1] : vector<16x32xf32> to vector<16xf32>
    %337 = vector.shape_cast %336 : vector<16xf32> to vector<16x1xf32>
    %c0_229 = arith.constant 0 : index
    %c0_230 = arith.constant 0 : index
    %338 = vector.load %arg6[%c0_229, %c0_230] : memref<1x1xf32, #tpu.memory_space<vmem>>, vector<1x1xf32>
    %339 = vector.broadcast %338 : vector<1x1xf32> to vector<16x1xf32>
    %340 = arith.addf %337, %339 : vector<16x1xf32>
    %341 = arith.negf %340 : vector<16x1xf32>
    %342 = math.exp %341 : vector<16x1xf32>
    %cst_231 = arith.constant 1.000000e+00 : f32
    %343 = vector.broadcast %cst_231 : f32 to vector<16x1xf32>
    %344 = arith.addf %343, %342 : vector<16x1xf32>
    %345 = arith.divf %343, %344 : vector<16x1xf32>
    %346 = vector.broadcast %345 : vector<16x1xf32> to vector<16x32xf32>
    %347 = arith.mulf %346, %1 : vector<16x32xf32>
    %cst_232 = arith.constant 1.000000e+00 : f32
    %348 = vector.broadcast %cst_232 : f32 to vector<16x1xf32>
    %349 = arith.subf %348, %345 : vector<16x1xf32>
    %350 = vector.broadcast %349 : vector<16x1xf32> to vector<16x32xf32>
    %351 = arith.mulf %350, %332 : vector<16x32xf32>
    %352 = arith.addf %347, %351 : vector<16x32xf32>
    %c0_233 = arith.constant 0 : index
    %c0_234 = arith.constant 0 : index
    %c0_235 = arith.constant 0 : index
    %353 = vector.load %arg7[%c0_233, %c0_234, %c0_235] : memref<1x16x32xf32, #tpu.memory_space<vmem>>, vector<1x16x32xf32>
    %354 = vector.shape_cast %353 : vector<1x16x32xf32> to vector<16x32xf32>
    %355 = vector.shape_cast %352 : vector<16x32xf32> to vector<1x16x32xf32>
    tpu.vector_store %arg7[%c0_233, %c0_234, %c0_235], %355 {strides = array<i32>} : memref<1x16x32xf32, #tpu.memory_space<vmem>>, vector<1x16x32xf32>,
    return
  }
  func.func @transform_0(%arg0: i32) -> (i32, i32, i32) {
    %c0_i32 = arith.constant 0 : i32
    %c0_i32_0 = arith.constant 0 : i32
    %c0_i32_1 = arith.constant 0 : i32
    return %arg0, %c0_i32, %c0_i32_0 : i32, i32, i32
  }
  func.func @transform_1(%arg0: i32) -> (i32, i32, i32, i32) {
    %c0_i32 = arith.constant 0 : i32
    %c0_i32_0 = arith.constant 0 : i32
    %c0_i32_1 = arith.constant 0 : i32
    %c0_i32_2 = arith.constant 0 : i32
    %c0_i32_3 = arith.constant 0 : i32
    return %c0_i32, %c0_i32_0, %c0_i32_1, %c0_i32_2 : i32, i32, i32, i32
  }
  func.func @transform_2(%arg0: i32) -> (i32, i32) {
    %c0_i32 = arith.constant 0 : i32
    %c0_i32_0 = arith.constant 0 : i32
    %c0_i32_1 = arith.constant 0 : i32
    return %c0_i32, %c0_i32_0 : i32, i32
  }
  func.func @transform_3(%arg0: i32) -> (i32, i32, i32) {
    %c0_i32 = arith.constant 0 : i32
    %c0_i32_0 = arith.constant 0 : i32
    %c0_i32_1 = arith.constant 0 : i32
    return %arg0, %c0_i32, %c0_i32_0 : i32, i32, i32
  }
  func.func @transform_4(%arg0: i32) -> (i32, i32) {
    %c0_i32 = arith.constant 0 : i32
    %c0_i32_0 = arith.constant 0 : i32
    %c0_i32_1 = arith.constant 0 : i32
    return %c0_i32, %c0_i32_0 : i32, i32
  }
  func.func @transform_5(%arg0: i32) -> (i32, i32) {
    %c0_i32 = arith.constant 0 : i32
    %c0_i32_0 = arith.constant 0 : i32
    %c0_i32_1 = arith.constant 0 : i32
    return %c0_i32, %c0_i32_0 : i32, i32
  }
  func.func @transform_6(%arg0: i32) -> (i32, i32, i32) {
    %c0_i32 = arith.constant 0 : i32
    %c0_i32_0 = arith.constant 0 : i32
    %c0_i32_1 = arith.constant 0 : i32
    return %arg0, %c0_i32, %c0_i32_0 : i32, i32, i32
  }
}

</mosaic_0001>

<bundles_post_ra>
// kernel: encoder_conv_forward.1
= control target key start
LH: loop header
LB: loop body
LE: loop exit
PB: predicated region body
PF: predicated region fallthrough
CT: control target
= control target key end

     0   :  { %s5762_s0 = inlined_call_operand.vmem [shape: f32[2,16,32], index: 0, kind: input, shape index: {}]   ;;  %s5763_s1 = inlined_call_operand.hbm [shape: f32[7,5,32,64], index: 1, kind: input, shape index: {}]   ;;  %s5764_s2 = inlined_call_operand.vmem [shape: f32[7,64], index: 2, kind: input, shape index: {}]   ;;  %s5765_s3 = inlined_call_operand.vmem [shape: f32[2,7,32], index: 3, kind: input, shape index: {}]   ;;  %s5766_s4 = inlined_call_operand.vmem [shape: f32[1,32], index: 4, kind: input, shape index: {}]   ;;  %s5767_s5 = inlined_call_operand.<no memory space> [shape: f32[1,1], index: 5, kind: input, shape index: {}]   ;;  %s5768_s6 = inlined_call_operand.hbm [shape: f32[2,16,32], index: 6, kind: output, shape index: {}]  }
   0x1   :  { %v11_v0 = vstv %s5767_s5 }
   0x2   :  { %12 = vst [vmem:[#allocation3] sm:$0x1] %v11_v0 }
   0x3   :  { %13 = vsyncpa [#allocation5], 0 }
   0x4   :  { %14 = vsyncpa [#allocation6], 0 }
   0x5   :  { %16 = vsyncpa [#allocation6 + $0x1], 0  ;;  %s5297_s23 = smov 0   ;;  %s5299_s24 = smov 0  }
   0x6   :  { %s5301_s25 = smov 0   ;;  %s5303_s26 = smov 0  }
   0x7 LB: > { %s5318_s5 = sadd.s32 4294967295, %s5248_s26   ;;  %s3951_s27 = sadd.s32 4294967294, %s5248_s26   ;;  %s5248_s26 = sphi %s5303_s26, %s5784_s26   ;;  %s5244_s25 = sphi %s5301_s25, %s5783_s25   ;;  %s5240_s24 = sphi %s5299_s24, %s5782_s24   ;;  %s5236_s23 = sphi %s5297_s23, %s5781_s23  }
   0x8   : > { %s5322_s28 = sadd.s32 1, %s5248_s26   ;;  %s165_s29 = sadd.s32 1, %s5244_s25 }
   0x9   : > { %s162_s30 = ssub.s32 %s5248_s26, %s5322_s28  ;;  %p175_p0 = scmp.ne.s32.totalorder %s5244_s25, %s5240_s24 }
   0xa   : > { %p163_p1 = scmp.eq.s32.totalorder %s162_s30, 0  ;;  %p176_p2 = scmp.eq.s32.totalorder %s5318_s5, 1 }
   0xb   : > { %p181_p3 = scmp.ne.s32.totalorder %s5240_s24, %s5236_s23  ;;  %p182_p4 = scmp.eq.s32.totalorder %s3951_s27, 1 }
   0xc   : > { %s5333_s7 = scalar_select %p163_p1, %s5244_s25, %s165_s29  }
   0xd   : > { %p5335_p5 = por %p176_p2, %p175_p0  ;;  %p5339_p6 = por %p182_p4, %p181_p3 }
   0xe   : > { %p3952_p7 = scmp.ge.s32.totalorder %s5248_s26, 1  ;;  %p189_p8 = scmp.lt.s32.totalorder %s5248_s26, 3 }
   0xf   : > { %s5772_s8 = scalar_select %p5335_p5, 1, 0 }
  0x10   : > { %s5773_s9 = scalar_select %p5339_p6, 1, 0 }
  0x11   : > { %p5769_p9 = scmp.eq.s32.totalorder %s5318_s5, 0  ;;  %p5346_p10 = pnand %p3952_p7, %p189_p8 }
  0x12   : > { %s5250_s11 = smov [#allocation4]   ;;  %s5154_s16 = scalar_lea.hbm %s5763_s1, 17920 }
  0x13   : > { %s5774_s10 = scalar_select %p5346_p10, 1, 0 }
  0x14   : > { %s201_s12 = sshll.u32 %s5250_s11, 4  ;;  %p5007_p11 = pneg %p5346_p10  ;;  %s202_s12 = int_to_ptr.vmem [resolvable:$true] %s201_s12 }
  0x15   : > { %p5155_p13 = scmp.ne.s32.totalorder %s5763_s1, %s5154_s16  ;;  %p5161_p3 = scmp.lt.u32.totalorder %s5154_s16, %s5763_s1 }
  0x16   : > { %p5354_p12 = pnand %p5769_p9, %p5007_p11 }
  0x18   : > { %p5156_p0 = pneg %p5354_p12 }
  0x1a   : > { %p5157_p1 = pnand %p5156_p0, %p5155_p13 }
  0x1c   : > { %p5158_p2 = pneg %p5157_p1 }
  0x1e   : > { %p5163_p4 = pnand %p5161_p3, %p5158_p2 }
  0x20   : > { %5166 = shalt.err (!%p5163_p4)
}
  0x21   : > { %s5167_s21 = scalar_lea.vmem %s202_s12, 17920  ;;  %p5175_p9 = scmp.lt.s32.totalorder %s202_s12, %s202_s12 }
  0x22   : > { %p5168_p7 = scmp.ne.s32.totalorder %s202_s12, %s5167_s21  ;;  %p5176_p6 = scmp.lt.s32.totalorder %s5167_s21, %s5167_s21 }
  0x24   : > { %p5170_p8 = pnand %p5168_p7, %p5156_p0  ;;  %p5177_p5 = por %p5176_p6, %p5175_p9 }
  0x26   : > { %p5171_p11 = pneg %p5170_p8 }
  0x28   : > { %p5178_p10 = pnand %p5177_p5, %p5171_p11 }
  0x2a   : > { %5181 = shalt.err (!%p5178_p10)
}
  0x2b   : > { %s5251_s22 = smov 128   ;;  %s5252_s27 = smov 8  }
  0x2c   : > { %5010 = dma.hbm_to_vmem [thread:$0]  (!%p5354_p12), %s5763_s1, 17920, %s202_s12, [#allocation5], %s5251_s22, %s5251_s22, %s5252_s27  }
  0x2d   : > { %p5776_p13 = scmp.ne.s32.totalorder %s5774_s10, 0 }
  0x2e   : > { %p5777_p1 = scmp.eq.s32.totalorder (!%p5776_p13), %s5318_s5, 0 }
  0x2f   : > { %241 = sbr.rel (%p5776_p13) target bundleno = 3211 (0xc8b), region = 44 }
  0x36   : > { %5227 = dma.done.wait (%p5777_p1), [#allocation5], 17920   ;;  %p5778_p0 = pmov %p5777_p1 }
  0x37   : > { %p275_p5 = scmp.lt.s32.totalorder %s5318_s5, 1  ;;  %vm286_vm0 = vcmask 254976   ;;  %v5253_v1 = vmov 0.0   ;;  %v301_v2 = vld [vmem:[#allocation4] sm:$0xff]  ;;  %v302_v3 = vld [vmem:[#allocation4 + $0x8] sm:$0xff]  ;;  %vm289_vm1 = vcmask 261120   ;;  %v297_v57 = vlaneseq }
  0x38   : > { %5229 = vsyncadd (%p5778_p0), [#allocation5], 4294949376  ;;  %287 = vst.msk [vmem:[#allocation2] sm:$0x3] %vm286_vm0, %v5253_v1  ;;  %v482_v4 = vld [vmem:[#allocation4 + $0x40] sm:$0xff]  ;;  %v4651_v5 = vpack.c.bf16 %v302_v3, %v301_v2  ;;  %v483_v6 = vld [vmem:[#allocation4 + $0x48] sm:$0xff] }
  0x39   : > { %288 = vst.msk [vmem:[#allocation2 + $0x12] sm:$0x3] %vm286_vm0, %v5253_v1  ;;  %s5382_s11 = scalar_select %p275_p5, %s5318_s5, 1  ;;  %v303_v7 = vld [vmem:[#allocation4 + $0x10] sm:$0xff]  ;;  %v304_v8 = vld [vmem:[#allocation4 + $0x18] sm:$0xff]  ;;  %v4667_v9 = vpack.c.bf16 %v483_v6, %v482_v4  ;;  %v389_v16 = vld [vmem:[#allocation4 + $0x20] sm:$0xff] }
  0x3a   : > { %v4655_v10 = vpack.c.bf16 %v304_v8, %v303_v7  ;;  %v484_v11 = vld [vmem:[#allocation4 + $0x50] sm:$0xff]  ;;  %v485_v12 = vld [vmem:[#allocation4 + $0x58] sm:$0xff]  ;;  %4652 = vmatprep.subr.bf16.mxu1 %v4651_v5  ;;  %v390_v17 = vld [vmem:[#allocation4 + $0x28] sm:$0xff]  ;;  %vm486_vm2 = vcmask 1045504   ;;  %vm394_vm3 = vcmask 1046528   ;;  %vm578_vm4 = vcmask 1044480  }
  0x3b   : > { %s4054_s12 = sshll.u32 %s5382_s11, 4  ;;  %v4671_v14 = vpack.c.bf16 %v485_v12, %v484_v11  ;;  %4654 = vmatpush3.bf16.msra.mxu1 %v4651_v5  ;;  %4668 = vmatprep.subr.bf16.mxu0 %v4667_v9  ;;  %v574_v18 = vld [vmem:[#allocation4 + $0x60] sm:$0xff]  ;;  %v575_v19 = vld [vmem:[#allocation4 + $0x68] sm:$0xff]  ;;  %v4659_v20 = vpack.c.bf16 %v390_v17, %v389_v16  ;;  %v391_v22 = vld [vmem:[#allocation4 + $0x30] sm:$0xff]  ;;  %vm670_vm5 = vcmask 1043456   ;;  %v5420_v58 = vshrl.u32 %v297_v57, 7 }
  0x3c   : > { %s279_s14 = scalar_lea.vmem %s5762_s0, %s4054_s12  ;;  %4670 = vmatpush3.bf16.msra.mxu0 %v4667_v9  ;;  %4656 = vmatprep.subr.bf16.mxu1 %v4655_v10  ;;  %v4675_v21 = vpack.c.bf16 %v575_v19, %v574_v18  ;;  %v392_v23 = vld [vmem:[#allocation4 + $0x38] sm:$0xff]  ;;  %v576_v26 = vld [vmem:[#allocation4 + $0x70] sm:$0xff]  ;;  %v666_v43 = vld [vmem:[#allocation4 + $0x80] sm:$0xff]  ;;  %s5254_s17 = smov 96  }
  0x3d   : > { %v5388_v13 = vld [vmem:[%s279_s14] sm:$0xff]  ;;  %v5390_v15 = vld [vmem:[%s279_s14 + $0x8] sm:$0xff]  ;;  %4672 = vmatprep.subr.bf16.mxu0 %v4671_v14  ;;  %v4663_v25 = vpack.c.bf16 %v392_v23, %v391_v22  ;;  %v577_v27 = vld [vmem:[#allocation4 + $0x78] sm:$0xff]  ;;  %v299_v61 = vsub.s32 0, %v5420_v58  ;;  %s3960_s18 = sshll.u32 %s5382_s11, 3  ;;  %s272_s11 = sand.u32 1, %s5240_s24  }
  0x3e   : > { %290 = vst.msk [vmem:[#allocation2 + $0x2] sm:$0xff] %vm289_vm1, %v5388_v13  ;;  %291 = vst.msk [vmem:[#allocation2 + $0xa] sm:$0xff] %vm289_vm1, %v5390_v15  ;;  %v4679_v40 = vpack.c.bf16 %v577_v27, %v576_v26  ;;  %v667_v44 = vld [vmem:[#allocation4 + $0x88] sm:$0xff]  ;;  %v668_v50 = vld [vmem:[#allocation4 + $0x90] sm:$0xff]  ;;  %s5435_s21 = scalar_lea.vmem %s5765_s3, %s3960_s18  ;;  %s3957_s12 = sshll.u32 %s272_s11, 4 }
  0x3f   : > { %4658 = vmatpush3.bf16.msra.mxu1 %v4655_v10  ;;  %v4683_v47 = vpack.c.bf16 %v667_v44, %v666_v43  ;;  %v669_v51 = vld [vmem:[#allocation4 + $0x98] sm:$0xff]  ;;  %v5426_v62 = vld [vmem:[%s5764_s2] sm:$0x7f]  ;;  %v805_v17 = vld [vmem:[#allocation4 + $0xb0] sm:$0xff]  ;;  %s4055_s13 = sshll.u32 %s5318_s5, 8  ;;  %s274_s10 = scalar_lea.vmem [#allocation7], %s3957_s12 }
  0x40   : > { %4674 = vmatpush3.bf16.msra.mxu0 %v4671_v14  ;;  %4660 = vmatprep.subr.bf16.mxu1 %v4659_v20  ;;  %v4687_v53 = vpack.c.bf16 %v669_v51, %v668_v50  ;;  %v300_v63 = vrot.slane %v5426_v62, %v299_v61  ;;  %v803_v12 = vld [vmem:[#allocation4 + $0xa0] sm:$0xff]  ;;  %v804_v14 = vld [vmem:[#allocation4 + $0xa8] sm:$0xff]  ;;  %v806_v18 = vld [vmem:[#allocation4 + $0xb8] sm:$0xff]  ;;  %s3865_s14 = sshll.u32 %s274_s10, 4  ;;  %s5721_s5 = scalar_lea.sflag [#allocation6], %s272_s11  ;;  %s5718_s14 = int_to_ptr.vmem [resolvable:$true] %s3865_s14 }
  0x41   : > { %4676 = vmatprep.subr.bf16.mxu0 %v4675_v21  ;;  %v4691_v16 = vpack.c.bf16 %v804_v14, %v803_v12  ;;  %v892_v22 = vld [vmem:[#allocation4 + $0xc8] sm:$0xff]  ;;  %v894_v43 = vld [vmem:[#allocation4 + $0xd8] sm:$0xff]  ;;  %v1167_v12 = vld [vmem:[#allocation4 + $0x130] sm:$0xff]  ;;  %s5182_s18 = scalar_lea.vmem %s5718_s14, 256  ;;  %p5779_p9 = scmp.ne.s32.totalorder %s5772_s8, 0 }
  0x42   : > { %v1168_v14 = vld [vmem:[#allocation4 + $0x138] sm:$0xff]  ;;  %p5183_p6 = scmp.ne.s32.totalorder %s5718_s14, %s5182_s18  ;;  %s5256_s19 = smov [#allocation7]  }
  0x43   : > { %s5186_s20 = sshll.u32 %s5256_s19, 4  ;;  %s5187_s20 = int_to_ptr.vmem [resolvable:$false] %s5186_s20 }
  0x44   : > { %p5184_p10 = pnand %p5183_p6, %p5779_p9  ;;  %p5189_p2 = scmp.lt.s32.totalorder %s5718_s14, %s5187_s20 }
  0x45   : > { %v294_v24 = vld [vmem:[#allocation2] sm:$0xff]  ;;  %v295_v28 = vld [vmem:[#allocation2 + $0x8] sm:$0xff]  ;;  %v296_v30 = vld [vmem:[#allocation2 + $0x10] sm:$0xf] }
  0x46   : > { %4274 = vmatprep.mubr.msk.f32.mxu1 %vm289_vm1, %v294_v24  ;;  %v487_v29 = vrot.slane %v294_v24, 2  ;;  %v395_v31 = vrot.slane %v294_v24, 1  ;;  %v579_v32 = vrot.slane %v294_v24, 3  ;;  %v488_v33 = vrot.slane %v295_v28, 2  ;;  %p5185_p12 = pneg %p5184_p10 }
  0x47   : > { %4275 = vmatmul.mubr.msk.f32.vlgmr.msra.gmra.mrb[0].mxu1 %vm289_vm1, %v295_v28  ;;  %v490_v34 = vrot.slane %v296_v30, 2  ;;  %v396_v35 = vrot.slane %v295_v28, 1  ;;  %v398_v36 = vrot.slane %v296_v30, 1  ;;  %v580_v37 = vrot.slane %v295_v28, 3 }
  0x48   : > { %4662 = vmatpush3.bf16.msra.mxu1 %v4659_v20  ;;  %v5399_v38 = vsel %vm486_vm2, %v487_v29, %v488_v33  ;;  %v582_v46 = vrot.slane %v296_v30, 3  ;;  %v671_v48 = vrot.slane %v294_v24, 4  ;;  %v672_v49 = vrot.slane %v295_v28, 4 }
  0x49   : > { %v5402_v39 = vsel %vm486_vm2, %v488_v33, %v490_v34  ;;  %4664 = vmatprep.subr.bf16.mxu1 %v4663_v25  ;;  %v397_v41 = vsel %vm394_vm3, %v395_v31, %v396_v35  ;;  %4296 = vmatprep.mubr.msk.f32.mxu0 %vm289_vm1, %v5399_v38  ;;  %v581_v42 = vsel %vm578_vm4, %v579_v32, %v580_v37  ;;  %v674_v55 = vrot.slane %v296_v30, 4 }
  0x4a   : > { %4285 = vmatprep.mubr.msk.f32.mxu1 %vm289_vm1, %v397_v41  ;;  %4297 = vmatmul.mubr.msk.f32.vlgmr.msra.gmra.mrb[0].mxu0 %vm289_vm1, %v5402_v39  ;;  %v399_v45 = vsel %vm394_vm3, %v396_v35, %v398_v36  ;;  %v583_v52 = vsel %vm578_vm4, %v580_v37, %v582_v46  ;;  %v673_v54 = vsel %vm670_vm5, %v671_v48, %v672_v49  ;;  %v984_v46 = vld [vmem:[#allocation4 + $0xe8] sm:$0xff] }
  0x4b   : > { %4678 = vmatpush3.bf16.msra.mxu0 %v4675_v21  ;;  %4307 = vmatprep.mubr.msk.f32.mxu0 %vm289_vm1, %v581_v42  ;;  %v675_v56 = vsel %vm670_vm5, %v672_v49, %v674_v55  ;;  %v4695_v20 = vpack.c.bf16 %v806_v18, %v805_v17  ;;  %v891_v21 = vld [vmem:[#allocation4 + $0xc0] sm:$0xff]  ;;  %v893_v42 = vld [vmem:[#allocation4 + $0xd0] sm:$0xff]  ;;  %v4727_v18 = vpack.c.bf16 %v1168_v14, %v1167_v12  ;;  %v1484_v12 = vld [vmem:[#allocation4 + $0x198] sm:$0xff] }
  0x4c   : > { %4666 = vmatpush3.bf16.msra.mxu1 %v4663_v25  ;;  %4680 = vmatprep.subr.bf16.mxu0 %v4679_v40  ;;  %v4699_v24 = vpack.c.bf16 %v892_v22, %v891_v21  ;;  %v5438_v25 = vld [vmem:[%s5435_s21] sm:$0x7f]  ;;  %v4703_v44 = vpack.c.bf16 %v894_v43, %v893_v42  ;;  %v1304_v42 = vld [vmem:[#allocation4 + $0x158] sm:$0xff] }
  0x4d   : > { %4692 = vmatprep.subr.bf16.mxu1 %v4691_v16  ;;  %v762_v26 = vrot.slane %v5438_v25, %v299_v61 }
  0x4f   : > { %4286 = vmatmul.mubr.msk.f32.vlgmr.msra.gmra.mrb[0].mxu1 %vm289_vm1, %v399_v45  ;;  %4682 = vmatpush3.bf16.msra.mxu0 %v4679_v40  ;;  %v983_v45 = vld [vmem:[#allocation4 + $0xe0] sm:$0xff] }
  0x50   : > { %4684 = vmatprep.subr.bf16.mxu0 %v4683_v47  ;;  %4694 = vmatpush3.bf16.msra.mxu1 %v4691_v16  ;;  %v4707_v50 = vpack.c.bf16 %v984_v46, %v983_v45  ;;  %v1390_v45 = vld [vmem:[#allocation4 + $0x168] sm:$0xff] }
  0x51   : > { %4696 = vmatprep.subr.bf16.mxu1 %v4695_v20 }
  0x52   : > { %4308 = vmatmul.mubr.msk.f32.vlgmr.msra.gmra.mrb[0].mxu0 %vm289_vm1, %v583_v52  ;;  %v985_v52 = vld [vmem:[#allocation4 + $0xf0] sm:$0xff] }
  0x53   : > { %4686 = vmatpush3.bf16.msra.mxu0 %v4683_v47  ;;  %4318 = vmatprep.mubr.msk.f32.mxu0 %vm289_vm1, %v673_v54 }
  0x54   : > { %4688 = vmatprep.subr.bf16.mxu0 %v4687_v53  ;;  %4698 = vmatpush3.bf16.msra.mxu1 %v4695_v20 }
  0x55   : > { %4700 = vmatprep.subr.bf16.mxu1 %v4699_v24 }
  0x57   : > { %4690 = vmatpush3.bf16.msra.mxu0 %v4687_v53  ;;  %v986_v53 = vld [vmem:[#allocation4 + $0xf8] sm:$0xff] }
  0x5a   : > { %4319 = vmatmul.mubr.msk.f32.vlgmr.msra.gmra.mrb[0].mxu0 %vm289_vm1, %v675_v56  ;;  %v4711_v56 = vpack.c.bf16 %v986_v53, %v985_v52 }
 0x122   : > { %v4287_v59 = vpop.f32.mrb[0].mxu1 }
 0x123   : > { %v470_v60 = vpop.f32.mrb[1].mxu1  ;;  %v4931_v0 = vadd.f32 %v4287_v59, %v300_v63  ;;  %v1074_v59 = vld [vmem:[#allocation4 + $0x100] sm:$0xff] }
 0x124   : > { %v4933_v1 = vadd.f32 %v470_v60, %v300_v63  ;;  %v1075_v60 = vld [vmem:[#allocation4 + $0x108] sm:$0xff] }
 0x125   : > { %v4715_v63 = vpack.c.bf16 %v1075_v60, %v1074_v59 }
 0x12d   : > { %v4320_v2 = vpop.f32.mrb[0].mxu0 }
 0x12e   : > { %v4932_v3 = vadd.f32 %v4931_v0, %v4320_v2  ;;  %v746_v4 = vpop.f32.mrb[1].mxu0  ;;  %v1077_v2 = vld [vmem:[#allocation4 + $0x118] sm:$0xff] }
 0x12f   : > { %v4934_v5 = vadd.f32 %v4933_v1, %v746_v4  ;;  %v1076_v1 = vld [vmem:[#allocation4 + $0x110] sm:$0xff] }
 0x130   : > { %v3972_v6 = vmul.f32 -1.442695, %v4932_v3 }
 0x131   : > { %v3971_v7 = vmul.f32 -1.442695, %v4934_v5 }
 0x132   : > { %5060 = vpow2.f32 %v3972_v6 }
 0x133   : > { %5062 = vpow2.f32 %v3971_v7  ;;  %v1165_v7 = vld [vmem:[#allocation4 + $0x120] sm:$0xff] }
 0x13c   : > { %v5061_v8 = vpop.eup %5060 }
 0x13d   : > { %v5063_v9 = vpop.eup %5062  ;;  %v772_v11 = vadd.f32 1.0, %v5061_v8  ;;  %v1166_v8 = vld [vmem:[#allocation4 + $0x128] sm:$0xff] }
 0x13e   : > { %v771_v10 = vadd.f32 1.0, %v5063_v9 }
 0x140   : > { %5064 = vrcp.f32 %v771_v10  ;;  %v4723_v10 = vpack.c.bf16 %v1166_v8, %v1165_v7 }
 0x141   : > { %5066 = vrcp.f32 %v772_v11 }
 0x142   : > { %5068 = vtanh.f32 %v4934_v5  ;;  %v4719_v5 = vpack.c.bf16 %v1077_v2, %v1076_v1  ;;  %v1392_v1 = vld [vmem:[#allocation4 + $0x178] sm:$0xff] }
 0x143   : > { %5070 = vtanh.f32 %v4932_v3 }
 0x14a   : > { %v5065_v19 = vpop.eup %5064 }
 0x14b   : > { %779 = vrot.lane.b32.xlu0 %v5065_v19, %s5254_s17  ;;  %v5067_v23 = vpop.eup %5066 }
 0x14c   : > { %v5069_v27 = vpop.eup %5068 }
 0x14d   : > { %v763_v28 = vadd.f32 %v5069_v27, %v762_v26  ;;  %v5071_v29 = vpop.eup %5070 }
 0x14e   : > { %v764_v33 = vadd.f32 %v5071_v29, %v762_v26 }
 0x14f   : > { %781 = vrot.lane.b32.xlu0 %v5067_v23, %s5254_s17  ;;  %v800_v23 = vsub.s32 1, %v5420_v58 }
 0x1bd   : > { %v780_v30 = vpop.permute.xlu0 %779 }
 0x1be   : > { %v785_v31 = vmul.f32 %v780_v30, %v763_v28 }
 0x1c0   : > { %v789_v32 = vadd.f32 %v785_v31, %v5399_v38 }
 0x1c1   : > { %v782_v34 = vpop.permute.xlu0 %781 }
 0x1c2   : > { %v791_v35 = vmul.f32 0.70710677, %v789_v32  ;;  %v786_v36 = vmul.f32 %v782_v34, %v764_v33 }
 0x1c4   : > { %793 = vst.msk [vmem:[#allocation2 + $0x2] sm:$0xff] %vm289_vm1, %v791_v35  ;;  %v790_v37 = vadd.f32 %v786_v36, %v5402_v39  ;;  %v1301_v36 = vld [vmem:[#allocation4 + $0x140] sm:$0xff] }
 0x1c6   : > { %v792_v40 = vmul.f32 0.70710677, %v790_v37  ;;  %v1302_v37 = vld [vmem:[#allocation4 + $0x148] sm:$0xff] }
 0x1c8   : > { %794 = vst.msk [vmem:[#allocation2 + $0xa] sm:$0xff] %vm289_vm1, %v792_v40  ;;  %v4731_v40 = vpack.c.bf16 %v1302_v37, %v1301_v36  ;;  %v1665_v36 = vld [vmem:[#allocation4 + $0x1d0] sm:$0xff]  ;;  %v1666_v37 = vld [vmem:[#allocation4 + $0x1d8] sm:$0xff] }
 0x1ca   : > { %4732 = vmatprep.subr.bf16.mxu0 %v4731_v40 }
 0x1cb   : > { %v5445_v41 = vld [vmem:[#allocation2] sm:$0xff]  ;;  %4734 = vmatpush3.bf16.msra.mxu0 %v4731_v40 }
 0x1cc   : > { %4329 = vmatprep.mubr.msk.f32.mxu1 %vm289_vm1, %v5445_v41  ;;  %v896_v39 = vrot.slane %v5445_v41, 1  ;;  %v987_v55 = vrot.slane %v5445_v41, 2  ;;  %v1078_v4 = vrot.slane %v5445_v41, 3  ;;  %v1169_v17 = vrot.slane %v5445_v41, 4  ;;  %v1303_v41 = vld [vmem:[#allocation4 + $0x150] sm:$0xff] }
 0x1cd   : > { %v4735_v43 = vpack.c.bf16 %v1304_v42, %v1303_v41  ;;  %v4767_v42 = vpack.c.bf16 %v1666_v37, %v1665_v36  ;;  %v1982_v36 = vld [vmem:[#allocation4 + $0x238] sm:$0xff] }
 0x1cf   : > { %v5449_v38 = vld [vmem:[#allocation2 + $0x8] sm:$0xff]  ;;  %v797_v48 = vld [vmem:[#allocation2 + $0x10] sm:$0xf]  ;;  %4736 = vmatprep.subr.bf16.mxu0 %v4735_v43 }
 0x1d0   : > { %4330 = vmatmul.mubr.msk.f32.vlgmr.msra.gmra.mrb[2].mxu1 %vm289_vm1, %v5449_v38  ;;  %v897_v47 = vrot.slane %v5449_v38, 1  ;;  %v899_v51 = vrot.slane %v797_v48, 1  ;;  %v988_v54 = vrot.slane %v5449_v38, 2  ;;  %v990_v0 = vrot.slane %v797_v48, 2  ;;  %4738 = vmatpush3.bf16.msra.mxu0 %v4735_v43 }
 0x1d1   : > { %4702 = vmatpush3.bf16.msra.mxu1 %v4699_v24  ;;  %v1079_v3 = vrot.slane %v5449_v38, 3  ;;  %v1081_v11 = vrot.slane %v797_v48, 3  ;;  %v1170_v16 = vrot.slane %v5449_v38, 4  ;;  %v1172_v21 = vrot.slane %v797_v48, 4  ;;  %v1389_v38 = vld [vmem:[#allocation4 + $0x160] sm:$0xff] }
 0x1d2   : > { %4704 = vmatprep.subr.bf16.mxu1 %v4703_v44  ;;  %v898_v49 = vsel %vm394_vm3, %v896_v39, %v897_v47  ;;  %v900_v57 = vsel %vm394_vm3, %v897_v47, %v899_v51  ;;  %v5462_v61 = vsel %vm486_vm2, %v987_v55, %v988_v54  ;;  %v5469_v6 = vsel %vm486_vm2, %v988_v54, %v990_v0  ;;  %v1391_v0 = vld [vmem:[#allocation4 + $0x170] sm:$0xff] }
 0x1d3   : > { %4340 = vmatprep.mubr.msk.f32.mxu1 %vm289_vm1, %v898_v49  ;;  %v1080_v9 = vsel %vm578_vm4, %v1078_v4, %v1079_v3  ;;  %v1082_v19 = vsel %vm578_vm4, %v1079_v3, %v1081_v11  ;;  %v1171_v20 = vsel %vm670_vm5, %v1169_v17, %v1170_v16  ;;  %v1173_v22 = vsel %vm670_vm5, %v1170_v16, %v1172_v21  ;;  %v1481_v3 = vld [vmem:[#allocation4 + $0x180] sm:$0xff]  ;;  %v1482_v4 = vld [vmem:[#allocation4 + $0x188] sm:$0xff]  ;;  %v1483_v11 = vld [vmem:[#allocation4 + $0x190] sm:$0xff] }
 0x1d4   : > { %v801_v24 = vrot.slane %v5426_v62, %v800_v23  ;;  %v4739_v46 = vpack.c.bf16 %v1390_v45, %v1389_v38  ;;  %v1260_v47 = vrot.slane %v5438_v25, %v800_v23  ;;  %v4743_v2 = vpack.c.bf16 %v1392_v1, %v1391_v0  ;;  %v1802_v0 = vld [vmem:[#allocation4 + $0x1f8] sm:$0xff] }
 0x1d5   : > { %4706 = vmatpush3.bf16.msra.mxu1 %v4703_v44  ;;  %v4751_v17 = vpack.c.bf16 %v1484_v12, %v1483_v11 }
 0x1d6   : > { %4708 = vmatprep.subr.bf16.mxu1 %v4707_v50  ;;  %4740 = vmatprep.subr.bf16.mxu0 %v4739_v46 }
 0x1d8   : > { %4341 = vmatmul.mubr.msk.f32.vlgmr.msra.gmra.mrb[2].mxu1 %vm289_vm1, %v900_v57 }
 0x1d9   : > { %4710 = vmatpush3.bf16.msra.mxu1 %v4707_v50  ;;  %4351 = vmatprep.mubr.msk.f32.mxu1 %vm289_vm1, %v5462_v61 }
 0x1da   : > { %4712 = vmatprep.subr.bf16.mxu1 %v4711_v56 }
 0x1dd   : > { %4714 = vmatpush3.bf16.msra.mxu1 %v4711_v56 }
 0x1de   : > { %4716 = vmatprep.subr.bf16.mxu1 %v4715_v63 }
 0x1e0   : > { %4352 = vmatmul.mubr.msk.f32.vlgmr.msra.gmra.mrb[2].mxu1 %vm289_vm1, %v5469_v6 }
 0x1e1   : > { %4718 = vmatpush3.bf16.msra.mxu1 %v4715_v63  ;;  %4362 = vmatprep.mubr.msk.f32.mxu1 %vm289_vm1, %v1080_v9  ;;  %v4747_v9 = vpack.c.bf16 %v1482_v4, %v1481_v3  ;;  %v1887_v3 = vld [vmem:[#allocation4 + $0x200] sm:$0xff]  ;;  %v1888_v4 = vld [vmem:[#allocation4 + $0x208] sm:$0xff] }
 0x1e2   : > { %4720 = vmatprep.subr.bf16.mxu1 %v4719_v5 }
 0x1e5   : > { %4722 = vmatpush3.bf16.msra.mxu1 %v4719_v5 }
 0x1e6   : > { %4724 = vmatprep.subr.bf16.mxu1 %v4723_v10 }
 0x1e8   : > { %4363 = vmatmul.mubr.msk.f32.vlgmr.msra.gmra.mrb[2].mxu1 %vm289_vm1, %v1082_v19  ;;  %v1572_v19 = vld [vmem:[#allocation4 + $0x1a0] sm:$0xff] }
 0x1e9   : > { %4726 = vmatpush3.bf16.msra.mxu1 %v4723_v10  ;;  %4373 = vmatprep.mubr.msk.f32.mxu1 %vm289_vm1, %v1171_v20  ;;  %v1573_v20 = vld [vmem:[#allocation4 + $0x1a8] sm:$0xff] }
 0x1ea   : > { %4728 = vmatprep.subr.bf16.mxu1 %v4727_v18 }
 0x1ed   : > { %4730 = vmatpush3.bf16.msra.mxu1 %v4727_v18 }
 0x1f0   : > { %4374 = vmatmul.mubr.msk.f32.vlgmr.msra.gmra.mrb[2].mxu1 %vm289_vm1, %v1173_v22  ;;  %v4755_v22 = vpack.c.bf16 %v1573_v20, %v1572_v19 }
 0x2c3   : > { %v4375_v26 = vpop.f32.mrb[2].mxu1 }
 0x2c4   : > { %v4935_v27 = vadd.f32 %v4375_v26, %v801_v24  ;;  %v1244_v28 = vpop.f32.mrb[3].mxu1  ;;  %v1575_v26 = vld [vmem:[#allocation4 + $0x1b8] sm:$0xff] }
 0x2c5   : > { %v4936_v29 = vadd.f32 %v1244_v28, %v801_v24  ;;  %v1574_v24 = vld [vmem:[#allocation4 + $0x1b0] sm:$0xff] }
 0x2c6   : > { %v3984_v30 = vmul.f32 -1.442695, %v4935_v27 }
 0x2c7   : > { %v3983_v31 = vmul.f32 -1.442695, %v4936_v29 }
 0x2c8   : > { %5072 = vpow2.f32 %v3984_v30 }
 0x2c9   : > { %5074 = vpow2.f32 %v3983_v31  ;;  %v1663_v31 = vld [vmem:[#allocation4 + $0x1c0] sm:$0xff] }
 0x2d2   : > { %v5073_v32 = vpop.eup %5072 }
 0x2d3   : > { %v5075_v33 = vpop.eup %5074  ;;  %v1270_v35 = vadd.f32 1.0, %v5073_v32  ;;  %v1664_v32 = vld [vmem:[#allocation4 + $0x1c8] sm:$0xff] }
 0x2d4   : > { %v1269_v34 = vadd.f32 1.0, %v5075_v33 }
 0x2d6   : > { %5076 = vrcp.f32 %v1269_v34  ;;  %v4763_v34 = vpack.c.bf16 %v1664_v32, %v1663_v31  ;;  %v1980_v31 = vld [vmem:[#allocation4 + $0x228] sm:$0xff] }
 0x2d7   : > { %5078 = vrcp.f32 %v1270_v35 }
 0x2d8   : > { %5080 = vtanh.f32 %v4936_v29  ;;  %v4759_v29 = vpack.c.bf16 %v1575_v26, %v1574_v24 }
 0x2d9   : > { %5082 = vtanh.f32 %v4935_v27 }
 0x2e0   : > { %v5077_v44 = vpop.eup %5076 }
 0x2e1   : > { %1277 = vrot.lane.b32.xlu1 %v5077_v44, %s5254_s17  ;;  %v5079_v39 = vpop.eup %5078 }
 0x2e2   : > { %v5081_v48 = vpop.eup %5080 }
 0x2e3   : > { %v1261_v49 = vadd.f32 %v5081_v48, %v1260_v47  ;;  %v5083_v50 = vpop.eup %5082 }
 0x2e4   : > { %v1262_v54 = vadd.f32 %v5083_v50, %v1260_v47 }
 0x2e5   : > { %1279 = vrot.lane.b32.xlu1 %v5079_v39, %s5254_s17 }
 0x353   : > { %v1278_v51 = vpop.permute.xlu1 %1277 }
 0x354   : > { %v1283_v52 = vmul.f32 %v1278_v51, %v1261_v49 }
 0x356   : > { %v1287_v53 = vadd.f32 %v1283_v52, %v5462_v61 }
 0x357   : > { %v1280_v55 = vpop.permute.xlu1 %1279 }
 0x358   : > { %v1289_v56 = vmul.f32 0.70710677, %v1287_v53  ;;  %v1284_v57 = vmul.f32 %v1280_v55, %v1262_v54 }
 0x35a   : > { %1291 = vst.msk [vmem:[#allocation2 + $0x2] sm:$0xff] %vm289_vm1, %v1289_v56  ;;  %v1288_v59 = vadd.f32 %v1284_v57, %v5469_v6  ;;  %v1799_v57 = vld [vmem:[#allocation4 + $0x1e0] sm:$0xff] }
 0x35c   : > { %v1290_v60 = vmul.f32 0.70710677, %v1288_v59  ;;  %v1800_v59 = vld [vmem:[#allocation4 + $0x1e8] sm:$0xff] }
 0x35e   : > { %1292 = vst.msk [vmem:[#allocation2 + $0xa] sm:$0xff] %vm289_vm1, %v1290_v60  ;;  %v4771_v60 = vpack.c.bf16 %v1800_v59, %v1799_v57  ;;  %v2163_v57 = vld [vmem:[#allocation4 + $0x270] sm:$0xff]  ;;  %v2164_v59 = vld [vmem:[#allocation4 + $0x278] sm:$0xff] }
 0x360   : > { %4772 = vmatprep.subr.bf16.mxu1 %v4771_v60 }
 0x361   : > { %v5492_v63 = vld [vmem:[#allocation2] sm:$0xff]  ;;  %4774 = vmatpush3.bf16.msra.mxu1 %v4771_v60 }
 0x362   : > { %4384 = vmatprep.mubr.msk.f32.mxu0 %vm289_vm1, %v5492_v63  ;;  %v1394_v5 = vrot.slane %v5492_v63, 1  ;;  %v1485_v16 = vrot.slane %v5492_v63, 2  ;;  %v1576_v28 = vrot.slane %v5492_v63, 3  ;;  %v1667_v41 = vrot.slane %v5492_v63, 4  ;;  %v1801_v63 = vld [vmem:[#allocation4 + $0x1f0] sm:$0xff] }
 0x363   : > { %v4775_v1 = vpack.c.bf16 %v1802_v0, %v1801_v63  ;;  %v4807_v0 = vpack.c.bf16 %v2164_v59, %v2163_v57  ;;  %v2480_v57 = vld [vmem:[#allocation4 + $0x2d8] sm:$0xff] }
 0x365   : > { %v5496_v61 = vld [vmem:[#allocation2 + $0x8] sm:$0xff]  ;;  %v1295_v7 = vld [vmem:[#allocation2 + $0x10] sm:$0xf]  ;;  %4776 = vmatprep.subr.bf16.mxu1 %v4775_v1 }
 0x366   : > { %4385 = vmatmul.mubr.msk.f32.vlgmr.msra.gmra.mrb[2].mxu0 %vm289_vm1, %v5496_v61  ;;  %v1395_v6 = vrot.slane %v5496_v61, 1  ;;  %v1397_v10 = vrot.slane %v1295_v7, 1  ;;  %v1486_v14 = vrot.slane %v5496_v61, 2  ;;  %v1488_v23 = vrot.slane %v1295_v7, 2  ;;  %4778 = vmatpush3.bf16.msra.mxu1 %v4775_v1 }
 0x367   : > { %4742 = vmatpush3.bf16.msra.mxu0 %v4739_v46  ;;  %v1577_v27 = vrot.slane %v5496_v61, 3  ;;  %v1579_v35 = vrot.slane %v1295_v7, 3  ;;  %v1668_v40 = vrot.slane %v5496_v61, 4  ;;  %v1670_v38 = vrot.slane %v1295_v7, 4 }
 0x368   : > { %4744 = vmatprep.subr.bf16.mxu0 %v4743_v2  ;;  %v1396_v8 = vsel %vm394_vm3, %v1394_v5, %v1395_v6  ;;  %v1398_v18 = vsel %vm394_vm3, %v1395_v6, %v1397_v10  ;;  %v5509_v21 = vsel %vm486_vm2, %v1485_v16, %v1486_v14  ;;  %v5516_v30 = vsel %vm486_vm2, %v1486_v14, %v1488_v23  ;;  %v1890_v23 = vld [vmem:[#allocation4 + $0x218] sm:$0xff] }
 0x369   : > { %4395 = vmatprep.mubr.msk.f32.mxu0 %vm289_vm1, %v1396_v8  ;;  %v1578_v33 = vsel %vm578_vm4, %v1576_v28, %v1577_v27  ;;  %v1580_v43 = vsel %vm578_vm4, %v1577_v27, %v1579_v35  ;;  %v1669_v44 = vsel %vm670_vm5, %v1667_v41, %v1668_v40  ;;  %v1671_v45 = vsel %vm670_vm5, %v1668_v40, %v1670_v38  ;;  %v1981_v35 = vld [vmem:[#allocation4 + $0x230] sm:$0xff] }
 0x36a   : > { %v1298_v46 = vsub.s32 2, %v5420_v58  ;;  %v4779_v5 = vpack.c.bf16 %v1888_v4, %v1887_v3  ;;  %v4791_v41 = vpack.c.bf16 %v1982_v36, %v1981_v35  ;;  %v1796_v4 = vsub.s32 3, %v5420_v58 }
 0x36b   : > { %4746 = vmatpush3.bf16.msra.mxu0 %v4743_v2 }
 0x36c   : > { %4748 = vmatprep.subr.bf16.mxu0 %v4747_v9  ;;  %v1299_v39 = vrot.slane %v5426_v62, %v1298_v46  ;;  %4780 = vmatprep.subr.bf16.mxu1 %v4779_v5  ;;  %v1758_v6 = vrot.slane %v5438_v25, %v1298_v46 }
 0x36e   : > { %4396 = vmatmul.mubr.msk.f32.vlgmr.msra.gmra.mrb[2].mxu0 %vm289_vm1, %v1398_v18 }
 0x36f   : > { %4750 = vmatpush3.bf16.msra.mxu0 %v4747_v9  ;;  %4406 = vmatprep.mubr.msk.f32.mxu0 %vm289_vm1, %v5509_v21 }
 0x370   : > { %4752 = vmatprep.subr.bf16.mxu0 %v4751_v17 }
 0x373   : > { %4754 = vmatpush3.bf16.msra.mxu0 %v4751_v17 }
 0x374   : > { %4756 = vmatprep.subr.bf16.mxu0 %v4755_v22 }
 0x376   : > { %4407 = vmatmul.mubr.msk.f32.vlgmr.msra.gmra.mrb[2].mxu0 %vm289_vm1, %v5516_v30 }
 0x377   : > { %4758 = vmatpush3.bf16.msra.mxu0 %v4755_v22  ;;  %4417 = vmatprep.mubr.msk.f32.mxu0 %vm289_vm1, %v1578_v33  ;;  %v1889_v22 = vld [vmem:[#allocation4 + $0x210] sm:$0xff] }
 0x378   : > { %4760 = vmatprep.subr.bf16.mxu0 %v4759_v29  ;;  %v4783_v27 = vpack.c.bf16 %v1890_v23, %v1889_v22  ;;  %v2300_v23 = vld [vmem:[#allocation4 + $0x298] sm:$0xff] }
 0x37b   : > { %4762 = vmatpush3.bf16.msra.mxu0 %v4759_v29 }
 0x37c   : > { %4764 = vmatprep.subr.bf16.mxu0 %v4763_v34 }
 0x37e   : > { %4418 = vmatmul.mubr.msk.f32.vlgmr.msra.gmra.mrb[2].mxu0 %vm289_vm1, %v1580_v43  ;;  %v2070_v43 = vld [vmem:[#allocation4 + $0x240] sm:$0xff] }
 0x37f   : > { %4766 = vmatpush3.bf16.msra.mxu0 %v4763_v34  ;;  %4428 = vmatprep.mubr.msk.f32.mxu0 %vm289_vm1, %v1669_v44  ;;  %v2071_v44 = vld [vmem:[#allocation4 + $0x248] sm:$0xff] }
 0x380   : > { %4768 = vmatprep.subr.bf16.mxu0 %v4767_v42 }
 0x383   : > { %4770 = vmatpush3.bf16.msra.mxu0 %v4767_v42 }
 0x386   : > { %4429 = vmatmul.mubr.msk.f32.vlgmr.msra.gmra.mrb[2].mxu0 %vm289_vm1, %v1671_v45  ;;  %v4795_v45 = vpack.c.bf16 %v2071_v44, %v2070_v43 }
 0x459   : > { %v4430_v47 = vpop.f32.mrb[2].mxu0 }
 0x45a   : > { %v4937_v48 = vadd.f32 %v4430_v47, %v1299_v39  ;;  %v1742_v49 = vpop.f32.mrb[3].mxu0  ;;  %v2073_v47 = vld [vmem:[#allocation4 + $0x258] sm:$0xff] }
 0x45b   : > { %v4938_v50 = vadd.f32 %v1742_v49, %v1299_v39  ;;  %v2072_v39 = vld [vmem:[#allocation4 + $0x250] sm:$0xff] }
 0x45c   : > { %v3996_v51 = vmul.f32 -1.442695, %v4937_v48 }
 0x45d   : > { %v3995_v52 = vmul.f32 -1.442695, %v4938_v50 }
 0x45e   : > { %5084 = vpow2.f32 %v3996_v51 }
 0x45f   : > { %5086 = vpow2.f32 %v3995_v52  ;;  %v2161_v52 = vld [vmem:[#allocation4 + $0x260] sm:$0xff] }
 0x468   : > { %v5085_v53 = vpop.eup %5084 }
 0x469   : > { %v5087_v54 = vpop.eup %5086  ;;  %v1768_v55 = vadd.f32 1.0, %v5085_v53  ;;  %v2162_v53 = vld [vmem:[#allocation4 + $0x268] sm:$0xff] }
 0x46a   : > { %v1767_v56 = vadd.f32 1.0, %v5087_v54 }
 0x46b   : > { %5088 = vrcp.f32 %v1768_v55  ;;  %v4803_v55 = vpack.c.bf16 %v2162_v53, %v2161_v52  ;;  %v2478_v52 = vld [vmem:[#allocation4 + $0x2c8] sm:$0xff] }
 0x46c   : > { %5090 = vrcp.f32 %v1767_v56 }
 0x46d   : > { %5092 = vtanh.f32 %v4937_v48 }
 0x46e   : > { %5094 = vtanh.f32 %v4938_v50  ;;  %v4799_v50 = vpack.c.bf16 %v2073_v47, %v2072_v39 }
 0x475   : > { %v5089_v2 = vpop.eup %5088 }
 0x476   : > { %v5091_v61 = vpop.eup %5090  ;;  %1777 = vrot.lane.b32.xlu1 %v5089_v2, %s5254_s17 }
 0x477   : > { %1775 = vrot.lane.b32.xlu0 %v5091_v61, %s5254_s17  ;;  %v5093_v7 = vpop.eup %5092 }
 0x478   : > { %v5095_v8 = vpop.eup %5094  ;;  %v1760_v9 = vadd.f32 %v5093_v7, %v1758_v6 }
 0x479   : > { %v1759_v11 = vadd.f32 %v5095_v8, %v1758_v6 }
 0x4e8   : > { %v1778_v10 = vpop.permute.xlu1 %1777 }
 0x4e9   : > { %v1782_v12 = vmul.f32 %v1778_v10, %v1760_v9  ;;  %v1776_v14 = vpop.permute.xlu0 %1775 }
 0x4ea   : > { %v1781_v16 = vmul.f32 %v1776_v14, %v1759_v11 }
 0x4eb   : > { %v1786_v17 = vadd.f32 %v1782_v12, %v5516_v30  ;;  %v1979_v30 = vld [vmem:[#allocation4 + $0x220] sm:$0xff] }
 0x4ec   : > { %v1785_v18 = vadd.f32 %v1781_v16, %v5509_v21  ;;  %v4787_v33 = vpack.c.bf16 %v1980_v31, %v1979_v30  ;;  %v2256_v31 = vrot.slane %v5438_v25, %v1796_v4 }
 0x4ed   : > { %v1788_v19 = vmul.f32 0.70710677, %v1786_v17 }
 0x4ee   : > { %v1787_v20 = vmul.f32 0.70710677, %v1785_v18  ;;  %v2297_v18 = vld [vmem:[#allocation4 + $0x280] sm:$0xff] }
 0x4ef   : > { %1790 = vst.msk [vmem:[#allocation2 + $0xa] sm:$0xff] %vm289_vm1, %v1788_v19  ;;  %v2298_v19 = vld [vmem:[#allocation4 + $0x288] sm:$0xff] }
 0x4f0   : > { %1789 = vst.msk [vmem:[#allocation2 + $0x2] sm:$0xff] %vm289_vm1, %v1787_v20  ;;  %v2299_v20 = vld [vmem:[#allocation4 + $0x290] sm:$0xff]  ;;  %v4811_v22 = vpack.c.bf16 %v2298_v19, %v2297_v18  ;;  %v2662_v19 = vld [vmem:[#allocation4 + $0x318] sm:$0xff] }
 0x4f1   : > { %v2661_v18 = vld [vmem:[#allocation4 + $0x310] sm:$0xff] }
 0x4f2   : > { %4812 = vmatprep.subr.bf16.mxu0 %v4811_v22 }
 0x4f3   : > { %4814 = vmatpush3.bf16.msra.mxu0 %v4811_v22 }
 0x4f6   : > { %v1793_v21 = vld [vmem:[#allocation2 + $0x10] sm:$0xf] }
 0x4f7   : > { %v1791_v24 = vld [vmem:[#allocation2] sm:$0xff]  ;;  %v5539_v26 = vld [vmem:[#allocation2 + $0x8] sm:$0xff]  ;;  %v1895_v34 = vrot.slane %v1793_v21, 1  ;;  %v1986_v46 = vrot.slane %v1793_v21, 2  ;;  %v2077_v56 = vrot.slane %v1793_v21, 3  ;;  %v2168_v61 = vrot.slane %v1793_v21, 4 }
 0x4f8   : > { %4439 = vmatprep.mubr.msk.f32.mxu1 %vm289_vm1, %v1791_v24  ;;  %v1892_v28 = vrot.slane %v1791_v24, 1  ;;  %v1893_v29 = vrot.slane %v5539_v26, 1  ;;  %v1983_v37 = vrot.slane %v1791_v24, 2  ;;  %v1984_v40 = vrot.slane %v5539_v26, 2 }
 0x4f9   : > { %4440 = vmatmul.mubr.msk.f32.vlgmr.msra.gmra.mrb[4].mxu1 %vm289_vm1, %v5539_v26  ;;  %v2074_v48 = vrot.slane %v1791_v24, 3  ;;  %v2075_v49 = vrot.slane %v5539_v26, 3  ;;  %v2165_v60 = vrot.slane %v1791_v24, 4  ;;  %v2166_v63 = vrot.slane %v5539_v26, 4 }
 0x4fa   : > { %4782 = vmatpush3.bf16.msra.mxu1 %v4779_v5  ;;  %v1894_v32 = vsel %vm394_vm3, %v1892_v28, %v1893_v29  ;;  %v1896_v42 = vsel %vm394_vm3, %v1893_v29, %v1895_v34  ;;  %v5551_v38 = vsel %vm486_vm2, %v1983_v37, %v1984_v40  ;;  %v5557_v51 = vsel %vm486_vm2, %v1984_v40, %v1986_v46  ;;  %v2385_v28 = vld [vmem:[#allocation4 + $0x2a0] sm:$0xff]  ;;  %v2386_v29 = vld [vmem:[#allocation4 + $0x2a8] sm:$0xff]  ;;  %v2388_v46 = vld [vmem:[#allocation4 + $0x2b8] sm:$0xff] }
 0x4fb   : > { %4450 = vmatprep.mubr.msk.f32.mxu1 %vm289_vm1, %v1894_v32  ;;  %4784 = vmatprep.subr.bf16.mxu1 %v4783_v27  ;;  %v2076_v54 = vsel %vm578_vm4, %v2074_v48, %v2075_v49  ;;  %v2078_v1 = vsel %vm578_vm4, %v2075_v49, %v2077_v56  ;;  %v2167_v2 = vsel %vm670_vm5, %v2165_v60, %v2166_v63  ;;  %v2479_v56 = vld [vmem:[#allocation4 + $0x2d0] sm:$0xff] }
 0x4fc   : > { %v2169_v3 = vsel %vm670_vm5, %v2166_v63, %v2168_v61  ;;  %v1797_v5 = vrot.slane %v5426_v62, %v1796_v4  ;;  %v4815_v24 = vpack.c.bf16 %v2300_v23, %v2299_v20  ;;  %v4819_v30 = vpack.c.bf16 %v2386_v29, %v2385_v28 }
 0x4fd   : > { %v4831_v63 = vpack.c.bf16 %v2480_v57, %v2479_v56  ;;  %v4847_v23 = vpack.c.bf16 %v2662_v19, %v2661_v18  ;;  %v2294_v29 = vsub.s32 4, %v5420_v58 }
 0x4fe   : > { %4786 = vmatpush3.bf16.msra.mxu1 %v4783_v27  ;;  %4816 = vmatprep.subr.bf16.mxu0 %v4815_v24 }
 0x4ff   : > { %4788 = vmatprep.subr.bf16.mxu1 %v4787_v33  ;;  %4818 = vmatpush3.bf16.msra.mxu0 %v4815_v24 }
 0x500   : > { %4820 = vmatprep.subr.bf16.mxu0 %v4819_v30 }
 0x501   : > { %4451 = vmatmul.mubr.msk.f32.vlgmr.msra.gmra.mrb[4].mxu1 %vm289_vm1, %v1896_v42 }
 0x502   : > { %4790 = vmatpush3.bf16.msra.mxu1 %v4787_v33  ;;  %4461 = vmatprep.mubr.msk.f32.mxu1 %vm289_vm1, %v5551_v38 }
 0x503   : > { %4792 = vmatprep.subr.bf16.mxu1 %v4791_v41 }
 0x506   : > { %4794 = vmatpush3.bf16.msra.mxu1 %v4791_v41 }
 0x507   : > { %4796 = vmatprep.subr.bf16.mxu1 %v4795_v45 }
 0x509   : > { %4462 = vmatmul.mubr.msk.f32.vlgmr.msra.gmra.mrb[4].mxu1 %vm289_vm1, %v5557_v51 }
 0x50a   : > { %4798 = vmatpush3.bf16.msra.mxu1 %v4795_v45  ;;  %4472 = vmatprep.mubr.msk.f32.mxu1 %vm289_vm1, %v2076_v54  ;;  %v2387_v45 = vld [vmem:[#allocation4 + $0x2b0] sm:$0xff] }
 0x50b   : > { %4800 = vmatprep.subr.bf16.mxu1 %v4799_v50  ;;  %v4823_v48 = vpack.c.bf16 %v2388_v46, %v2387_v45  ;;  %v2798_v46 = vld [vmem:[#allocation4 + $0x338] sm:$0xff] }
 0x50e   : > { %4802 = vmatpush3.bf16.msra.mxu1 %v4799_v50 }
 0x50f   : > { %4804 = vmatprep.subr.bf16.mxu1 %v4803_v55 }
 0x511   : > { %4473 = vmatmul.mubr.msk.f32.vlgmr.msra.gmra.mrb[4].mxu1 %vm289_vm1, %v2078_v1  ;;  %v2568_v1 = vld [vmem:[#allocation4 + $0x2e0] sm:$0xff] }
 0x512   : > { %4806 = vmatpush3.bf16.msra.mxu1 %v4803_v55  ;;  %4483 = vmatprep.mubr.msk.f32.mxu1 %vm289_vm1, %v2167_v2  ;;  %v2569_v2 = vld [vmem:[#allocation4 + $0x2e8] sm:$0xff] }
 0x513   : > { %4808 = vmatprep.subr.bf16.mxu1 %v4807_v0 }
 0x516   : > { %4810 = vmatpush3.bf16.msra.mxu1 %v4807_v0 }
 0x519   : > { %4484 = vmatmul.mubr.msk.f32.vlgmr.msra.gmra.mrb[4].mxu1 %vm289_vm1, %v2169_v3  ;;  %v4835_v3 = vpack.c.bf16 %v2569_v2, %v2568_v1  ;;  %v2885_v2 = vld [vmem:[#allocation4 + $0x350] sm:$0xff] }
 0x5ec   : > { %v4485_v6 = vpop.f32.mrb[4].mxu1 }
 0x5ed   : > { %v4939_v7 = vadd.f32 %v4485_v6, %v1797_v5  ;;  %v2240_v8 = vpop.f32.mrb[5].mxu1  ;;  %v2571_v6 = vld [vmem:[#allocation4 + $0x2f8] sm:$0xff] }
 0x5ee   : > { %v4940_v9 = vadd.f32 %v2240_v8, %v1797_v5  ;;  %v2570_v5 = vld [vmem:[#allocation4 + $0x2f0] sm:$0xff] }
 0x5ef   : > { %v4008_v10 = vmul.f32 -1.442695, %v4939_v7 }
 0x5f0   : > { %v4007_v11 = vmul.f32 -1.442695, %v4940_v9 }
 0x5f1   : > { %5096 = vpow2.f32 %v4008_v10 }
 0x5f2   : > { %5098 = vpow2.f32 %v4007_v11  ;;  %v2659_v11 = vld [vmem:[#allocation4 + $0x300] sm:$0xff] }
 0x5fb   : > { %v5097_v12 = vpop.eup %5096 }
 0x5fc   : > { %v5099_v14 = vpop.eup %5098  ;;  %v2266_v16 = vadd.f32 1.0, %v5097_v12  ;;  %v2660_v12 = vld [vmem:[#allocation4 + $0x308] sm:$0xff] }
 0x5fd   : > { %v2265_v17 = vadd.f32 1.0, %v5099_v14 }
 0x5fe   : > { %5100 = vrcp.f32 %v2266_v16  ;;  %v4843_v16 = vpack.c.bf16 %v2660_v12, %v2659_v11 }
 0x5ff   : > { %5102 = vrcp.f32 %v2265_v17 }
 0x600   : > { %5104 = vtanh.f32 %v4939_v7 }
 0x601   : > { %5106 = vtanh.f32 %v4940_v9  ;;  %v4839_v9 = vpack.c.bf16 %v2571_v6, %v2570_v5 }
 0x608   : > { %v5101_v26 = vpop.eup %5100 }
 0x609   : > { %v5103_v27 = vpop.eup %5102  ;;  %2275 = vrot.lane.b32.xlu1 %v5101_v26, %s5254_s17 }
 0x60a   : > { %2273 = vrot.lane.b32.xlu0 %v5103_v27, %s5254_s17  ;;  %v5105_v21 = vpop.eup %5104 }
 0x60b   : > { %v5107_v32 = vpop.eup %5106  ;;  %v2258_v33 = vadd.f32 %v5105_v21, %v2256_v31 }
 0x60c   : > { %v2257_v35 = vadd.f32 %v5107_v32, %v2256_v31 }
 0x67b   : > { %v2276_v34 = vpop.permute.xlu1 %2275 }
 0x67c   : > { %v2280_v36 = vmul.f32 %v2276_v34, %v2258_v33  ;;  %v2274_v37 = vpop.permute.xlu0 %2273 }
 0x67d   : > { %v2279_v40 = vmul.f32 %v2274_v37, %v2257_v35 }
 0x67e   : > { %v2284_v41 = vadd.f32 %v2280_v36, %v5557_v51  ;;  %v2477_v51 = vld [vmem:[#allocation4 + $0x2c0] sm:$0xff] }
 0x67f   : > { %v2283_v42 = vadd.f32 %v2279_v40, %v5551_v38  ;;  %v4827_v54 = vpack.c.bf16 %v2478_v52, %v2477_v51  ;;  %v2754_v51 = vrot.slane %v5438_v25, %v2294_v29  ;;  %v2886_v25 = vld [vmem:[#allocation4 + $0x358] sm:$0xff] }
 0x680   : > { %v2286_v43 = vmul.f32 0.70710677, %v2284_v41  ;;  %v4863_v5 = vpack.c.bf16 %v2886_v25, %v2885_v2  ;;  %v3296_v2 = vld [vmem:[#allocation4 + $0x3d8] sm:$0xff] }
 0x681   : > { %v2285_v44 = vmul.f32 0.70710677, %v2283_v42  ;;  %v2795_v42 = vld [vmem:[#allocation4 + $0x320] sm:$0xff] }
 0x682   : > { %2288 = vst.msk [vmem:[#allocation2 + $0xa] sm:$0xff] %vm289_vm1, %v2286_v43  ;;  %v2796_v43 = vld [vmem:[#allocation4 + $0x328] sm:$0xff] }
 0x683   : > { %2287 = vst.msk [vmem:[#allocation2 + $0x2] sm:$0xff] %vm289_vm1, %v2285_v44  ;;  %v2797_v44 = vld [vmem:[#allocation4 + $0x330] sm:$0xff]  ;;  %v4851_v45 = vpack.c.bf16 %v2796_v43, %v2795_v42 }
 0x685   : > { %4852 = vmatprep.subr.bf16.mxu1 %v4851_v45 }
 0x686   : > { %4854 = vmatpush3.bf16.msra.mxu1 %v4851_v45 }
 0x689   : > { %v2291_v38 = vld [vmem:[#allocation2 + $0x10] sm:$0xf] }
 0x68a   : > { %v2289_v39 = vld [vmem:[#allocation2] sm:$0xff]  ;;  %v5579_v47 = vld [vmem:[#allocation2 + $0x8] sm:$0xff]  ;;  %v2393_v55 = vrot.slane %v2291_v38, 1  ;;  %v2484_v4 = vrot.slane %v2291_v38, 2  ;;  %v2575_v17 = vrot.slane %v2291_v38, 3  ;;  %v2666_v27 = vrot.slane %v2291_v38, 4 }
 0x68b   : > { %4494 = vmatprep.mubr.msk.f32.mxu0 %vm289_vm1, %v2289_v39  ;;  %v2390_v49 = vrot.slane %v2289_v39, 1  ;;  %v2391_v50 = vrot.slane %v5579_v47, 1  ;;  %v2481_v59 = vrot.slane %v2289_v39, 2  ;;  %v2482_v60 = vrot.slane %v5579_v47, 2 }
 0x68c   : > { %4495 = vmatmul.mubr.msk.f32.vlgmr.msra.gmra.mrb[4].mxu0 %vm289_vm1, %v5579_v47  ;;  %v2572_v7 = vrot.slane %v2289_v39, 3  ;;  %v2573_v8 = vrot.slane %v5579_v47, 3  ;;  %v2663_v20 = vrot.slane %v2289_v39, 4  ;;  %v2664_v22 = vrot.slane %v5579_v47, 4 }
 0x68d   : > { %4822 = vmatpush3.bf16.msra.mxu0 %v4819_v30  ;;  %v2392_v53 = vsel %vm394_vm3, %v2390_v49, %v2391_v50  ;;  %v2394_v0 = vsel %vm394_vm3, %v2391_v50, %v2393_v55  ;;  %v5591_v61 = vsel %vm486_vm2, %v2481_v59, %v2482_v60  ;;  %v5597_v10 = vsel %vm486_vm2, %v2482_v60, %v2484_v4  ;;  %v2884_v49 = vld [vmem:[#allocation4 + $0x348] sm:$0xff] }
 0x68e   : > { %4505 = vmatprep.mubr.msk.f32.mxu0 %vm289_vm1, %v2392_v53  ;;  %4824 = vmatprep.subr.bf16.mxu0 %v4823_v48  ;;  %v2574_v14 = vsel %vm578_vm4, %v2572_v7, %v2573_v8  ;;  %v2576_v24 = vsel %vm578_vm4, %v2573_v8, %v2575_v17  ;;  %v2665_v26 = vsel %vm670_vm5, %v2663_v20, %v2664_v22  ;;  %v2975_v8 = vld [vmem:[#allocation4 + $0x360] sm:$0xff] }
 0x68f   : > { %v2667_v28 = vsel %vm670_vm5, %v2664_v22, %v2666_v27  ;;  %v2295_v30 = vrot.slane %v5426_v62, %v2294_v29  ;;  %v4855_v62 = vpack.c.bf16 %v2798_v46, %v2797_v44  ;;  %v3066_v22 = vld [vmem:[#allocation4 + $0x380] sm:$0xff]  ;;  %v3069_v29 = vld [vmem:[#allocation4 + $0x398] sm:$0xff] }
 0x691   : > { %4826 = vmatpush3.bf16.msra.mxu0 %v4823_v48  ;;  %4856 = vmatprep.subr.bf16.mxu1 %v4855_v62  ;;  %v2883_v48 = vld [vmem:[#allocation4 + $0x340] sm:$0xff] }
 0x692   : > { %4828 = vmatprep.subr.bf16.mxu0 %v4827_v54  ;;  %4858 = vmatpush3.bf16.msra.mxu1 %v4855_v62  ;;  %v4859_v50 = vpack.c.bf16 %v2884_v49, %v2883_v48  ;;  %v5654_v48 = vld [vmem:[%s5764_s2] sm:$0x7f] }
 0x694   : > { %4506 = vmatmul.mubr.msk.f32.vlgmr.msra.gmra.mrb[4].mxu0 %vm289_vm1, %v2394_v0  ;;  %4860 = vmatprep.subr.bf16.mxu1 %v4859_v50 }
 0x695   : > { %4830 = vmatpush3.bf16.msra.mxu0 %v4827_v54  ;;  %4516 = vmatprep.mubr.msk.f32.mxu0 %vm289_vm1, %v5591_v61 }
 0x696   : > { %4832 = vmatprep.subr.bf16.mxu0 %v4831_v63 }
 0x699   : > { %4834 = vmatpush3.bf16.msra.mxu0 %v4831_v63 }
 0x69a   : > { %4836 = vmatprep.subr.bf16.mxu0 %v4835_v3 }
 0x69c   : > { %4517 = vmatmul.mubr.msk.f32.vlgmr.msra.gmra.mrb[4].mxu0 %vm289_vm1, %v5597_v10 }
 0x69d   : > { %4838 = vmatpush3.bf16.msra.mxu0 %v4835_v3  ;;  %4527 = vmatprep.mubr.msk.f32.mxu0 %vm289_vm1, %v2574_v14  ;;  %v2977_v14 = vld [vmem:[#allocation4 + $0x370] sm:$0xff] }
 0x69e   : > { %4840 = vmatprep.subr.bf16.mxu0 %v4839_v9 }
 0x6a1   : > { %4842 = vmatpush3.bf16.msra.mxu0 %v4839_v9  ;;  %v2976_v9 = vld [vmem:[#allocation4 + $0x368] sm:$0xff] }
 0x6a2   : > { %4844 = vmatprep.subr.bf16.mxu0 %v4843_v16  ;;  %v4867_v11 = vpack.c.bf16 %v2976_v9, %v2975_v8  ;;  %v5660_v8 = vld [vmem:[%s5435_s21] sm:$0x7f]  ;;  %s5188_s21 = scalar_lea.vmem %s5187_s20, 512 }
 0x6a3   : > { %p5190_p3 = scmp.lt.s32.totalorder %s5188_s21, %s5182_s18 }
 0x6a4   : > { %4528 = vmatmul.mubr.msk.f32.vlgmr.msra.gmra.mrb[4].mxu0 %vm289_vm1, %v2576_v24 }
 0x6a5   : > { %4846 = vmatpush3.bf16.msra.mxu0 %v4843_v16  ;;  %4538 = vmatprep.mubr.msk.f32.mxu0 %vm289_vm1, %v2665_v26  ;;  %v2978_v16 = vld [vmem:[#allocation4 + $0x378] sm:$0xff]  ;;  %p5191_p4 = por %p5190_p3, %p5189_p2 }
 0x6a6   : > { %4848 = vmatprep.subr.bf16.mxu0 %v4847_v23  ;;  %v4871_v19 = vpack.c.bf16 %v2978_v16, %v2977_v14 }
 0x6a7   : > { %p5192_p7 = pnand %p5191_p4, %p5185_p12 }
 0x6a9   : > { %4850 = vmatpush3.bf16.msra.mxu0 %v4847_v23  ;;  %v3067_v23 = vld [vmem:[#allocation4 + $0x388] sm:$0xff] }
 0x6aa   : > { %v4875_v26 = vpack.c.bf16 %v3067_v23, %v3066_v22 }
 0x6ac   : > { %4539 = vmatmul.mubr.msk.f32.vlgmr.msra.gmra.mrb[4].mxu0 %vm289_vm1, %v2667_v28  ;;  %v3068_v28 = vld [vmem:[#allocation4 + $0x390] sm:$0xff] }
 0x77f   : > { %v4540_v31 = vpop.f32.mrb[4].mxu0 }
 0x780   : > { %v4941_v21 = vadd.f32 %v4540_v31, %v2295_v30  ;;  %v2738_v32 = vpop.f32.mrb[5].mxu0 }
 0x781   : > { %v4942_v33 = vadd.f32 %v2738_v32, %v2295_v30 }
 0x782   : > { %v4020_v34 = vmul.f32 -1.442695, %v4941_v21 }
 0x783   : > { %v4019_v35 = vmul.f32 -1.442695, %v4942_v33 }
 0x784   : > { %5108 = vpow2.f32 %v4020_v34  ;;  %v3158_v34 = vld [vmem:[#allocation4 + $0x3a8] sm:$0xff] }
 0x785   : > { %5110 = vpow2.f32 %v4019_v35 }
 0x78e   : > { %v5109_v36 = vpop.eup %5108 }
 0x78f   : > { %v5111_v37 = vpop.eup %5110  ;;  %v2764_v40 = vadd.f32 1.0, %v5109_v36 }
 0x790   : > { %v2763_v41 = vadd.f32 1.0, %v5111_v37 }
 0x791   : > { %5112 = vrcp.f32 %v2764_v40  ;;  %v3159_v40 = vld [vmem:[#allocation4 + $0x3b0] sm:$0xff] }
 0x792   : > { %5114 = vrcp.f32 %v2763_v41  ;;  %v3160_v41 = vld [vmem:[#allocation4 + $0x3b8] sm:$0xff] }
 0x793   : > { %5116 = vtanh.f32 %v4941_v21  ;;  %v4879_v21 = vpack.c.bf16 %v3069_v29, %v3068_v28  ;;  %v4887_v44 = vpack.c.bf16 %v3160_v41, %v3159_v40  ;;  %v3476_v40 = vld [vmem:[#allocation4 + $0x418] sm:$0xff] }
 0x794   : > { %5118 = vtanh.f32 %v4942_v33  ;;  %v3157_v33 = vld [vmem:[#allocation4 + $0x3a0] sm:$0xff] }
 0x795   : > { %v4883_v36 = vpack.c.bf16 %v3158_v34, %v3157_v33  ;;  %v3474_v33 = vld [vmem:[#allocation4 + $0x408] sm:$0xff] }
 0x79b   : > { %v5113_v39 = vpop.eup %5112 }
 0x79c   : > { %v5115_v47 = vpop.eup %5114  ;;  %2773 = vrot.lane.b32.xlu1 %v5113_v39, %s5254_s17 }
 0x79d   : > { %2771 = vrot.lane.b32.xlu0 %v5115_v47, %s5254_s17  ;;  %v5117_v52 = vpop.eup %5116  ;;  %v2792_v47 = vsub.s32 5, %v5420_v58 }
 0x79e   : > { %v5119_v38 = vpop.eup %5118  ;;  %v2756_v53 = vadd.f32 %v5117_v52, %v2754_v51 }
 0x79f   : > { %v2755_v55 = vadd.f32 %v5119_v38, %v2754_v51  ;;  %v2793_v49 = vrot.slane %v5654_v48, %v2792_v47  ;;  %v3252_v9 = vrot.slane %v5660_v8, %v2792_v47 }
 0x80e   : > { %v2774_v54 = vpop.permute.xlu1 %2773 }
 0x80f   : > { %v2778_v56 = vmul.f32 %v2774_v54, %v2756_v53  ;;  %v2772_v57 = vpop.permute.xlu0 %2771 }
 0x810   : > { %v2777_v59 = vmul.f32 %v2772_v57, %v2755_v55 }
 0x811   : > { %v2782_v60 = vadd.f32 %v2778_v56, %v5597_v10 }
 0x812   : > { %v2781_v63 = vadd.f32 %v2777_v59, %v5591_v61 }
 0x813   : > { %v2784_v0 = vmul.f32 0.70710677, %v2782_v60  ;;  %v3293_v60 = vld [vmem:[#allocation4 + $0x3c0] sm:$0xff] }
 0x814   : > { %v2783_v1 = vmul.f32 0.70710677, %v2781_v63  ;;  %v3294_v63 = vld [vmem:[#allocation4 + $0x3c8] sm:$0xff] }
 0x815   : > { %2786 = vst.msk [vmem:[#allocation2 + $0xa] sm:$0xff] %vm289_vm1, %v2784_v0  ;;  %v3295_v0 = vld [vmem:[#allocation4 + $0x3d0] sm:$0xff] }
 0x816   : > { %2785 = vst.msk [vmem:[#allocation2 + $0x2] sm:$0xff] %vm289_vm1, %v2783_v1  ;;  %v4891_v1 = vpack.c.bf16 %v3294_v63, %v3293_v60  ;;  %v4895_v25 = vpack.c.bf16 %v3296_v2, %v3295_v0  ;;  %v3657_v60 = vld [vmem:[#allocation4 + $0x450] sm:$0xff]  ;;  %v3658_v63 = vld [vmem:[#allocation4 + $0x458] sm:$0xff] }
 0x817   : > { %v4927_v2 = vpack.c.bf16 %v3658_v63, %v3657_v60 }
 0x818   : > { %4892 = vmatprep.subr.bf16.mxu0 %v4891_v1 }
 0x819   : > { %4894 = vmatpush3.bf16.msra.mxu0 %v4891_v1 }
 0x81a   : > { %4896 = vmatprep.subr.bf16.mxu0 %v4895_v25 }
 0x81c   : > { %v2789_v61 = vld [vmem:[#allocation2 + $0x10] sm:$0xf] }
 0x81d   : > { %v2787_v3 = vld [vmem:[#allocation2] sm:$0xff]  ;;  %v5619_v4 = vld [vmem:[#allocation2 + $0x8] sm:$0xff]  ;;  %v2891_v12 = vrot.slane %v2789_v61, 1  ;;  %v2982_v27 = vrot.slane %v2789_v61, 2  ;;  %v3073_v37 = vrot.slane %v2789_v61, 3  ;;  %v3164_v62 = vrot.slane %v2789_v61, 4  ;;  %4898 = vmatpush3.bf16.msra.mxu0 %v4895_v25 }
 0x81e   : > { %4549 = vmatprep.mubr.msk.f32.mxu1 %vm289_vm1, %v2787_v3  ;;  %v2888_v6 = vrot.slane %v2787_v3, 1  ;;  %v2889_v7 = vrot.slane %v5619_v4, 1  ;;  %v2979_v17 = vrot.slane %v2787_v3, 2  ;;  %v2980_v18 = vrot.slane %v5619_v4, 2 }
 0x81f   : > { %4550 = vmatmul.mubr.msk.f32.vlgmr.msra.gmra.mrb[6].mxu1 %vm289_vm1, %v5619_v4  ;;  %v3070_v30 = vrot.slane %v2787_v3, 3  ;;  %v3071_v31 = vrot.slane %v5619_v4, 3  ;;  %v3161_v42 = vrot.slane %v2787_v3, 4  ;;  %v3162_v43 = vrot.slane %v5619_v4, 4 }
 0x820   : > { %4862 = vmatpush3.bf16.msra.mxu1 %v4859_v50  ;;  %v2890_v10 = vsel %vm394_vm3, %v2888_v6, %v2889_v7  ;;  %v2892_v20 = vsel %vm394_vm3, %v2889_v7, %v2891_v12  ;;  %v5631_v24 = vsel %vm486_vm2, %v2979_v17, %v2980_v18  ;;  %v5637_v32 = vsel %vm486_vm2, %v2980_v18, %v2982_v27  ;;  %v3382_v6 = vld [vmem:[#allocation4 + $0x3e8] sm:$0xff]  ;;  %v3384_v27 = vld [vmem:[#allocation4 + $0x3f8] sm:$0xff] }
 0x821   : > { %4560 = vmatprep.mubr.msk.f32.mxu1 %vm289_vm1, %v2890_v10  ;;  %4864 = vmatprep.subr.bf16.mxu1 %v4863_v5  ;;  %v3072_v35 = vsel %vm578_vm4, %v3070_v30, %v3071_v31  ;;  %v3074_v45 = vsel %vm578_vm4, %v3071_v31, %v3073_v37  ;;  %v3163_v46 = vsel %vm670_vm5, %v3161_v42, %v3162_v43  ;;  %v3475_v37 = vld [vmem:[#allocation4 + $0x410] sm:$0xff] }
 0x822   : > { %v3165_v39 = vsel %vm670_vm5, %v3162_v43, %v3164_v62  ;;  %v4911_v43 = vpack.c.bf16 %v3476_v40, %v3475_v37 }
 0x824   : > { %4866 = vmatpush3.bf16.msra.mxu1 %v4863_v5  ;;  %v3381_v5 = vld [vmem:[#allocation4 + $0x3e0] sm:$0xff] }
 0x825   : > { %4868 = vmatprep.subr.bf16.mxu1 %v4867_v11  ;;  %v4899_v7 = vpack.c.bf16 %v3382_v6, %v3381_v5  ;;  %v3290_v6 = vsub.s32 6, %v5420_v58 }
 0x827   : > { %4561 = vmatmul.mubr.msk.f32.vlgmr.msra.gmra.mrb[6].mxu1 %vm289_vm1, %v2892_v20  ;;  %4900 = vmatprep.subr.bf16.mxu0 %v4899_v7  ;;  %v3750_v58 = vrot.slane %v5660_v8, %v3290_v6  ;;  %v4045_v8 = vld [vmem:[%s5766_s4] ss:$0 sm:$0xff] }
 0x828   : > { %4870 = vmatpush3.bf16.msra.mxu1 %v4867_v11  ;;  %4571 = vmatprep.mubr.msk.f32.mxu1 %vm289_vm1, %v5631_v24 }
 0x829   : > { %4872 = vmatprep.subr.bf16.mxu1 %v4871_v19 }
 0x82c   : > { %4874 = vmatpush3.bf16.msra.mxu1 %v4871_v19 }
 0x82d   : > { %4876 = vmatprep.subr.bf16.mxu1 %v4875_v26 }
 0x82f   : > { %4572 = vmatmul.mubr.msk.f32.vlgmr.msra.gmra.mrb[6].mxu1 %vm289_vm1, %v5637_v32 }
 0x830   : > { %4878 = vmatpush3.bf16.msra.mxu1 %v4875_v26  ;;  %4582 = vmatprep.mubr.msk.f32.mxu1 %vm289_vm1, %v3072_v35  ;;  %v3383_v26 = vld [vmem:[#allocation4 + $0x3f0] sm:$0xff] }
 0x831   : > { %4880 = vmatprep.subr.bf16.mxu1 %v4879_v21  ;;  %v4903_v30 = vpack.c.bf16 %v3384_v27, %v3383_v26 }
 0x834   : > { %4882 = vmatpush3.bf16.msra.mxu1 %v4879_v21 }
 0x835   : > { %4884 = vmatprep.subr.bf16.mxu1 %v4883_v36 }
 0x837   : > { %4583 = vmatmul.mubr.msk.f32.vlgmr.msra.gmra.mrb[6].mxu1 %vm289_vm1, %v3074_v45  ;;  %v3564_v45 = vld [vmem:[#allocation4 + $0x420] sm:$0xff] }
 0x838   : > { %4886 = vmatpush3.bf16.msra.mxu1 %v4883_v36  ;;  %4593 = vmatprep.mubr.msk.f32.mxu1 %vm289_vm1, %v3163_v46  ;;  %v3565_v46 = vld [vmem:[#allocation4 + $0x428] sm:$0xff] }
 0x839   : > { %4888 = vmatprep.subr.bf16.mxu1 %v4887_v44 }
 0x83c   : > { %4890 = vmatpush3.bf16.msra.mxu1 %v4887_v44 }
 0x83f   : > { %4594 = vmatmul.mubr.msk.f32.vlgmr.msra.gmra.mrb[6].mxu1 %vm289_vm1, %v3165_v39  ;;  %v4915_v39 = vpack.c.bf16 %v3565_v46, %v3564_v45 }
 0x912   : > { %v4595_v50 = vpop.f32.mrb[6].mxu1 }
 0x913   : > { %v4943_v51 = vadd.f32 %v4595_v50, %v2793_v49  ;;  %v3236_v52 = vpop.f32.mrb[7].mxu1  ;;  %v3567_v50 = vld [vmem:[#allocation4 + $0x438] sm:$0xff] }
 0x914   : > { %v4944_v38 = vadd.f32 %v3236_v52, %v2793_v49  ;;  %v3566_v49 = vld [vmem:[#allocation4 + $0x430] sm:$0xff] }
 0x915   : > { %v4032_v53 = vmul.f32 -1.442695, %v4943_v51 }
 0x916   : > { %v4031_v54 = vmul.f32 -1.442695, %v4944_v38 }
 0x917   : > { %5120 = vpow2.f32 %v4032_v53 }
 0x918   : > { %5122 = vpow2.f32 %v4031_v54  ;;  %v3655_v54 = vld [vmem:[#allocation4 + $0x440] sm:$0xff] }
 0x921   : > { %v5121_v55 = vpop.eup %5120 }
 0x922   : > { %v5123_v56 = vpop.eup %5122  ;;  %v3262_v57 = vadd.f32 1.0, %v5121_v55  ;;  %v3656_v55 = vld [vmem:[#allocation4 + $0x448] sm:$0xff] }
 0x923   : > { %v3261_v59 = vadd.f32 1.0, %v5123_v56 }
 0x924   : > { %5124 = vrcp.f32 %v3262_v57  ;;  %v4923_v57 = vpack.c.bf16 %v3656_v55, %v3655_v54 }
 0x925   : > { %5126 = vrcp.f32 %v3261_v59 }
 0x926   : > { %5128 = vtanh.f32 %v4943_v51 }
 0x927   : > { %5130 = vtanh.f32 %v4944_v38  ;;  %v4919_v38 = vpack.c.bf16 %v3567_v50, %v3566_v49 }
 0x92e   : > { %v5125_v3 = vpop.eup %5124 }
 0x92f   : > { %v5127_v4 = vpop.eup %5126  ;;  %3271 = vrot.lane.b32.xlu1 %v5125_v3, %s5254_s17 }
 0x930   : > { %3269 = vrot.lane.b32.xlu0 %v5127_v4, %s5254_s17  ;;  %v5129_v61 = vpop.eup %5128 }
 0x931   : > { %v5131_v10 = vpop.eup %5130  ;;  %v3254_v11 = vadd.f32 %v5129_v61, %v3252_v9 }
 0x932   : > { %v3253_v14 = vadd.f32 %v5131_v10, %v3252_v9 }
 0x9a1   : > { %v3272_v12 = vpop.permute.xlu1 %3271 }
 0x9a2   : > { %v3276_v16 = vmul.f32 %v3272_v12, %v3254_v11  ;;  %v3270_v17 = vpop.permute.xlu0 %3269 }
 0x9a3   : > { %v3275_v18 = vmul.f32 %v3270_v17, %v3253_v14 }
 0x9a4   : > { %v3280_v19 = vadd.f32 %v3276_v16, %v5637_v32  ;;  %v3473_v32 = vld [vmem:[#allocation4 + $0x400] sm:$0xff] }
 0x9a5   : > { %v3279_v20 = vadd.f32 %v3275_v18, %v5631_v24  ;;  %v4907_v35 = vpack.c.bf16 %v3474_v33, %v3473_v32 }
 0x9a6   : > { %v3282_v22 = vmul.f32 0.70710677, %v3280_v19 }
 0x9a7   : > { %v3281_v23 = vmul.f32 0.70710677, %v3279_v20 }
 0x9a8   : > { %3284 = vst.msk [vmem:[#allocation2 + $0xa] sm:$0xff] %vm289_vm1, %v3282_v22 }
 0x9a9   : > { %3283 = vst.msk [vmem:[#allocation2 + $0x2] sm:$0xff] %vm289_vm1, %v3281_v23 }
 0x9af   : > { %v3287_v24 = vld [vmem:[#allocation2 + $0x10] sm:$0xf] }
 0x9b0   : > { %v3285_v28 = vld [vmem:[#allocation2] sm:$0xff]  ;;  %v5667_v29 = vld [vmem:[#allocation2 + $0x8] sm:$0xff]  ;;  %v3389_v36 = vrot.slane %v3287_v24, 1  ;;  %v3480_v47 = vrot.slane %v3287_v24, 2  ;;  %v3571_v59 = vrot.slane %v3287_v24, 3  ;;  %v3662_v4 = vrot.slane %v3287_v24, 4 }
 0x9b1   : > { %4604 = vmatprep.mubr.msk.f32.mxu0 %vm289_vm1, %v3285_v28  ;;  %v3386_v31 = vrot.slane %v3285_v28, 1  ;;  %v3387_v21 = vrot.slane %v5667_v29, 1  ;;  %v3477_v41 = vrot.slane %v3285_v28, 2  ;;  %v3478_v42 = vrot.slane %v5667_v29, 2 }
 0x9b2   : > { %4605 = vmatmul.mubr.msk.f32.vlgmr.msra.gmra.mrb[6].mxu0 %vm289_vm1, %v5667_v29  ;;  %v3568_v51 = vrot.slane %v3285_v28, 3  ;;  %v3569_v52 = vrot.slane %v5667_v29, 3  ;;  %v3659_v0 = vrot.slane %v3285_v28, 4  ;;  %v3660_v1 = vrot.slane %v5667_v29, 4 }
 0x9b3   : > { %4902 = vmatpush3.bf16.msra.mxu0 %v4899_v7  ;;  %v3388_v34 = vsel %vm394_vm3, %v3386_v31, %v3387_v21  ;;  %v3390_v44 = vsel %vm394_vm3, %v3387_v21, %v3389_v36  ;;  %v5679_v62 = vsel %vm486_vm2, %v3477_v41, %v3478_v42  ;;  %v3481_v53 = vsel %vm486_vm2, %v3478_v42, %v3480_v47 }
 0x9b4   : > { %4615 = vmatprep.mubr.msk.f32.mxu0 %vm289_vm1, %v3388_v34  ;;  %4904 = vmatprep.subr.bf16.mxu0 %v4903_v30  ;;  %v3570_v56 = vsel %vm578_vm4, %v3568_v51, %v3569_v52  ;;  %v3572_v25 = vsel %vm578_vm4, %v3569_v52, %v3571_v59  ;;  %v3661_v3 = vsel %vm670_vm5, %v3659_v0, %v3660_v1  ;;  %v5255_v42 = vmov 0  }
 0x9b5   : > { %v3663_v5 = vsel %vm670_vm5, %v3660_v1, %v3662_v4  ;;  %v3291_v7 = vrot.slane %v5654_v48, %v3290_v6  ;;  %5059 = vset.pattern.permute.xlu1 %v5255_v42  ;;  %5058 = vset.pattern.permute.xlu0 %v5255_v42 }
 0x9b7   : > { %4906 = vmatpush3.bf16.msra.mxu0 %v4903_v30 }
 0x9b8   : > { %4908 = vmatprep.subr.bf16.mxu0 %v4907_v35 }
 0x9ba   : > { %4616 = vmatmul.mubr.msk.f32.vlgmr.msra.gmra.mrb[6].mxu0 %vm289_vm1, %v3390_v44 }
 0x9bb   : > { %4910 = vmatpush3.bf16.msra.mxu0 %v4907_v35  ;;  %4626 = vmatprep.mubr.msk.f32.mxu0 %vm289_vm1, %v5679_v62 }
 0x9bc   : > { %4912 = vmatprep.subr.bf16.mxu0 %v4911_v43 }
 0x9bf   : > { %4914 = vmatpush3.bf16.msra.mxu0 %v4911_v43  ;;  %v4046_v43 = vld [vmem:[#allocation3] ss:$0 sm:$0xff] }
 0x9c0   : > { %4916 = vmatprep.subr.bf16.mxu0 %v4915_v39 }
 0x9c2   : > { %4627 = vmatmul.mubr.msk.f32.vlgmr.msra.gmra.mrb[6].mxu0 %vm289_vm1, %v3481_v53 }
 0x9c3   : > { %4918 = vmatpush3.bf16.msra.mxu0 %v4915_v39  ;;  %4637 = vmatprep.mubr.msk.f32.mxu0 %vm289_vm1, %v3570_v56 }
 0x9c4   : > { %4920 = vmatprep.subr.bf16.mxu0 %v4919_v38 }
 0x9c7   : > { %4922 = vmatpush3.bf16.msra.mxu0 %v4919_v38 }
 0x9c8   : > { %4924 = vmatprep.subr.bf16.mxu0 %v4923_v57 }
 0x9ca   : > { %4638 = vmatmul.mubr.msk.f32.vlgmr.msra.gmra.mrb[6].mxu0 %vm289_vm1, %v3572_v25 }
 0x9cb   : > { %4926 = vmatpush3.bf16.msra.mxu0 %v4923_v57  ;;  %4648 = vmatprep.mubr.msk.f32.mxu0 %vm289_vm1, %v3661_v3 }
 0x9cc   : > { %4928 = vmatprep.subr.bf16.mxu0 %v4927_v2 }
 0x9cf   : > { %4930 = vmatpush3.bf16.msra.mxu0 %v4927_v2 }
 0x9d2   : > { %4649 = vmatmul.mubr.msk.f32.vlgmr.msra.gmra.mrb[6].mxu0 %vm289_vm1, %v3663_v5 }
 0xaa5   : > { %v4650_v9 = vpop.f32.mrb[6].mxu0 }
 0xaa6   : > { %v4945_v61 = vadd.f32 %v4650_v9, %v3291_v7  ;;  %v3734_v10 = vpop.f32.mrb[7].mxu0 }
 0xaa7   : > { %v4946_v11 = vadd.f32 %v3734_v10, %v3291_v7 }
 0xaa8   : > { %v4044_v12 = vmul.f32 -1.442695, %v4945_v61 }
 0xaa9   : > { %v4043_v14 = vmul.f32 -1.442695, %v4946_v11 }
 0xaaa   : > { %5132 = vpow2.f32 %v4044_v12 }
 0xaab   : > { %5134 = vpow2.f32 %v4043_v14 }
 0xab4   : > { %v5133_v16 = vpop.eup %5132 }
 0xab5   : > { %v5135_v17 = vpop.eup %5134  ;;  %v3760_v18 = vadd.f32 1.0, %v5133_v16 }
 0xab6   : > { %v3759_v19 = vadd.f32 1.0, %v5135_v17 }
 0xab7   : > { %5136 = vrcp.f32 %v3760_v18 }
 0xab8   : > { %5138 = vrcp.f32 %v3759_v19 }
 0xab9   : > { %5140 = vtanh.f32 %v4945_v61 }
 0xaba   : > { %5142 = vtanh.f32 %v4946_v11 }
 0xac1   : > { %v5137_v20 = vpop.eup %5136 }
 0xac2   : > { %v5139_v22 = vpop.eup %5138  ;;  %3769 = vrot.lane.b32.xlu1 %v5137_v20, %s5254_s17 }
 0xac3   : > { %3767 = vrot.lane.b32.xlu0 %v5139_v22, %s5254_s17  ;;  %v5141_v48 = vpop.eup %5140  ;;  %s5716_s17 = scalar_lea.hbm %s5768_s6, %s4055_s13 }
 0xac4   : > { %v5143_v23 = vpop.eup %5142  ;;  %v3752_v26 = vadd.f32 %v5141_v48, %v3750_v58 }
 0xac5   : > { %v3751_v28 = vadd.f32 %v5143_v23, %v3750_v58 }
 0xb34   : > { %v3770_v27 = vpop.permute.xlu1 %3769 }
 0xb35   : > { %v3774_v29 = vmul.f32 %v3770_v27, %v3752_v26  ;;  %v3768_v30 = vpop.permute.xlu0 %3767 }
 0xb36   : > { %v3773_v31 = vmul.f32 %v3768_v30, %v3751_v28 }
 0xb37   : > { %v3778_v21 = vadd.f32 %v3774_v29, %v3481_v53 }
 0xb38   : > { %v3777_v32 = vadd.f32 %v3773_v31, %v5679_v62 }
 0xb39   : > { %v3780_v33 = vmul.f32 0.70710677, %v3778_v21 }
 0xb3a   : > { %v3779_v24 = vmul.f32 0.70710677, %v3777_v32 }
 0xb3b   : > { %3782 = vst.msk [vmem:[#allocation2 + $0xa] sm:$0xff] %vm289_vm1, %v3780_v33 }
 0xb3c   : > { %3781 = vst.msk [vmem:[#allocation2 + $0x2] sm:$0xff] %vm289_vm1, %v3779_v24 }
 0xb42   : > { %v3784_v34 = vld [vmem:[#allocation2 + $0xa] sm:$0xff] }
 0xb43   : > { %v3793_v35 = vmul.f32 %v4045_v8, %v3784_v34  ;;  %v3783_v36 = vld [vmem:[#allocation2 + $0x2] sm:$0xff] }
 0xb44   : > { %v3792_v37 = vmul.f32 %v4045_v8, %v3783_v36 }
 0xb45   : > { %v3797_v40 = vsel %vm289_vm1, %v3793_v35, 0.0 }
 0xb46   : > { %3798 = vadd.xlane.f32.xlu1 %v3797_v40  ;;  %v3794_v41 = vsel %vm289_vm1, %v3792_v37, 0.0 }
 0xb47   : > { %3795 = vadd.xlane.f32.xlu0 %v3794_v41 }
 0xbd3   : > { %v3799_v44 = vpop.xlane.xlu1 %3798 }
 0xbd4   : > { %v3808_v45 = vadd.f32 %v4046_v43, %v3799_v44  ;;  %v3796_v46 = vpop.xlane.xlu0 %3795 }
 0xbd5   : > { %v3807_v62 = vadd.f32 %v4046_v43, %v3796_v46 }
 0xbd6   : > { %v4048_v39 = vmul.f32 -1.442695, %v3808_v45 }
 0xbd7   : > { %v4047_v47 = vmul.f32 -1.442695, %v3807_v62 }
 0xbd8   : > { %5144 = vpow2.f32 %v4048_v39 }
 0xbd9   : > { %5146 = vpow2.f32 %v4047_v47 }
 0xbe2   : > { %v5145_v49 = vpop.eup %5144 }
 0xbe3   : > { %v5147_v50 = vpop.eup %5146  ;;  %v3816_v51 = vadd.f32 1.0, %v5145_v49 }
 0xbe4   : > { %v3815_v52 = vadd.f32 1.0, %v5147_v50 }
 0xbe5   : > { %5148 = vrcp.f32 %v3816_v51 }
 0xbe6   : > { %5150 = vrcp.f32 %v3815_v52 }
 0xbef   : > { %v5149_v38 = vpop.eup %5148 }
 0xbf0   : > { %v5151_v53 = vpop.eup %5150  ;;  %3828 = vperm.xlu1 %5059, %v5149_v38   ;;  %v3834_v55 = vsub.f32 1.0, %v5149_v38 }
 0xbf1   : > { %3823 = vperm.xlu0 %5058, %v5151_v53   ;;  %v3833_v54 = vsub.f32 1.0, %v5151_v53 }
 0xbf4   : > { %3837 = vperm.xlu1 %5059, %v3833_v54  }
 0xbf8   : > { %3842 = vperm.xlu1 %5059, %v3834_v55  }
 0xc6f   : > { %v3829_v56 = vpop.permute.xlu1 %3828 }
 0xc70   : > { %v3824_v57 = vpop.permute.xlu0 %3823  ;;  %v3832_v2 = vmul.f32 %v3829_v56, %v5390_v15 }
 0xc71   : > { %v3831_v60 = vmul.f32 %v3824_v57, %v5388_v13 }
 0xc73   : > { %v3838_v59 = vpop.permute.xlu1 %3837 }
 0xc74   : > { %v3845_v63 = vmul.f32 %v3838_v59, %v3783_v36 }
 0xc76   : > { %v3847_v0 = vadd.f32 %v3845_v63, %v3831_v60 }
 0xc77   : > { %v3843_v1 = vpop.permute.xlu1 %3842 }
 0xc78   : > { %3849 = vst.msk [vmem:[%s274_s10] sm:$0xff] %vm289_vm1, %v3847_v0  ;;  %v3846_v25 = vmul.f32 %v3843_v1, %v3784_v34 }
 0xc7a   : > { %v3848_v13 = vadd.f32 %v3846_v25, %v3832_v2 }
 0xc7c   : > { %3850 = vst.msk [vmem:[%s274_s10 + $0x8] sm:$0xff] %vm289_vm1, %v3848_v13 }
 0xc7d   : > { %5195 = shalt.err (!%p5192_p7)
}
 0xc7e   : > { %s5196_s22 = scalar_lea.hbm %s5716_s17, 256  ;;  %s5200_s30 = scalar_lea.hbm %s5768_s6, 512 }
 0xc7f   : > { %p5197_p8 = scmp.ne.s32.totalorder %s5716_s17, %s5196_s22  ;;  %p5201_p1 = scmp.lt.u32.totalorder %s5716_s17, %s5768_s6 }
 0xc80   : > { %p5202_p0 = scmp.lt.u32.totalorder %s5200_s30, %s5196_s22  ;;  %p5204_p6 = scmp.lt.u32.totalorder %s5196_s22, %s5716_s17 }
 0xc81   : > { %p5198_p11 = pnand %p5197_p8, %p5779_p9 }
 0xc82   : > { %p5203_p5 = por %p5202_p0, %p5201_p1 }
 0xc83   : > { %p5199_p13 = pneg %p5198_p11 }
 0xc84   : > { %p5205_p10 = por %p5204_p6, %p5203_p5 }
 0xc86   : > { %p5206_p12 = pnand %p5205_p10, %p5199_p13 }
 0xc88   : > { %5209 = shalt.err (!%p5206_p12)
}
 0xc89   : > { %s5257_s13 = smov 128   ;;  %s5258_s10 = smov 8  }
 0xc8a   : > { %5005 = dma.vmem_to_hbm [thread:$0]  (%p5779_p9), %s5718_s14, 256, %s5716_s17, %s5721_s5, %s5257_s13, %s5257_s13, %s5258_s10  }
 0xc8b PF: > { %p5017_p2 = scmp.ge.s32.totalorder %s5248_s26, 2  ;;  %s3880_s15 = sand.u32 1, %s5236_s23  }
 0xc8c   : > { %p5780_p3 = scmp.ne.s32.totalorder %s5773_s9, 0  ;;  %s3881_s16 = scalar_lea.sflag [#allocation6], %s3880_s15 }
 0xc8e   : > { %p5012_p4 = pnand %p5017_p2, %p5780_p3 }
 0xc90   : > { %5231 = dma.done.wait (!%p5012_p4), %s3881_s16, 256  }
 0xc91   : > { %5233 = vsyncadd (!%p5012_p4), %s3881_s16, 4294967040  ;;  %p19_p7 = scmp.ge.s32.totalorder %s5322_s28, 4   ;;  %s5781_s23 = smov %s5240_s24 }
 0xc92   : > { %s5782_s24 = smov %s5244_s25  ;;  %s5783_s25 = smov %s5333_s7 }
 0xc93   : > { %s5784_s26 = smov %s5322_s28  ;;  %21 = sbr.rel (!%p19_p7) target bundleno = 7 (0x7), region = 121 }
 0xc9a   :  { %3886 = vsyncpa [#allocation5], 1 }
 0xc9b   :  { %3888 = vsyncpa [#allocation5 + $0x1], 1 }
 0xc9c   :  { %3889 = vsyncpa [#allocation6], 1 }
 0xc9d   :  { %3891 = vsyncpa [#allocation6 + $0x1], 1 }

</bundles_post_ra>
